<compile_context>
chip_gen: v7x
topology: tpu7x:2x2x1
jax: 0.10.0
libtpu: 0.0.40
codegen_flags: <defaults>
</compile_context>

<pallas_src>
import math

import jax
import jax.numpy as jnp
import numpy as np
from jax import lax
from jax.experimental import pallas as pl
from jax.experimental.pallas import tpu as pltpu

LOG_SQRT_2PI = math.log(math.sqrt(2.0 * math.pi))
# softplus(RHO_PAD) == 1  ->  log(sigma) == 0 for padded elements.
RHO_PAD = math.log(math.e - 1.0)


def _round_up(x, m):
    return ((x + m - 1) // m) * m


def bayesian_linear_kernel(x_ref, mu_ref, rho_ref, eps_ref,
                           y_ref, sum_ww_ref, sum_logq_ref,
                           acc_ww, acc_logq):
    i = pl.program_id(0)            # out_features tile
    k = pl.program_id(1)            # in_features tile (reduction, innermost)
    ni = pl.num_programs(0)
    nk = pl.num_programs(1)

    mu = mu_ref[...]                # (tile_out, tile_in)
    rho = rho_ref[...]
    eps = eps_ref[...]

    # Gaussian.sigma = log1p(exp(rho)); softplus is the overflow-stable form.
    sigma = jax.nn.softplus(rho)
    w = mu + sigma * eps            # sampled weight tile

    # Partial matmul: contract x (B, tile_in) with w (tile_out, tile_in) over the
    # in_features dim directly on the MXU (no explicit transpose of w).
    y_part = lax.dot_general(
        x_ref[...], w,
        dimension_numbers=(((1,), (1,)), ((), ())),
        preferred_element_type=jnp.float32)

    @pl.when(k == 0)
    def _():
        y_ref[...] = jnp.zeros_like(y_ref)

    y_ref[...] += y_part

    # Per-tile partial reductions for the log-probabilities.
    # log q element = -LOG_SQRT_2PI - log(sigma) - eps^2/2   (since w-mu = sigma*eps)
    # log p element = -LOG_SQRT_2PI - log(sigma_p) - w^2/(2 sigma_p^2)
    # Constant terms and the prior scaling are applied in the wrapper.
    ww_sum = jnp.sum(w * w)
    logq_sum = jnp.sum(jnp.log(sigma) + 0.5 * (eps * eps))

    @pl.when(jnp.logical_and(i == 0, k == 0))
    def _():
        acc_ww[0] = jnp.float32(0.0)
        acc_logq[0] = jnp.float32(0.0)

    acc_ww[0] += ww_sum
    acc_logq[0] += logq_sum

    @pl.when(jnp.logical_and(i == ni - 1, k == nk - 1))
    def _():
        sum_ww_ref[0] = acc_ww[0]
        sum_logq_ref[0] = acc_logq[0]


def bayesian_linear_forward(x, weight_mu, weight_rho, eps, prior_rho,
                            *, tile_out=256, tile_in=512):
    """Returns (y, log_prior, log_variational_posterior)."""
    B, in_f = x.shape
    out_f, _ = weight_mu.shape

    # Keep tiles (8,128)-aligned; shrink them for small problems.
    tile_in = min(tile_in, _round_up(in_f, 128))
    tile_out = min(tile_out, _round_up(out_f, 128))
    in_p = _round_up(in_f, tile_in)
    out_p = _round_up(out_f, tile_out)

    # Pad so the padding contributes exactly zero to the matmul and reductions.
    x_p = jnp.pad(x, ((0, 0), (0, in_p - in_f)))
    mu_p = jnp.pad(weight_mu, ((0, out_p - out_f), (0, in_p - in_f)))
    eps_p = jnp.pad(eps, ((0, out_p - out_f), (0, in_p - in_f)))
    rho_p = jnp.pad(weight_rho, ((0, out_p - out_f), (0, in_p - in_f)),
                    constant_values=RHO_PAD)

    ni = out_p // tile_out
    nk = in_p // tile_in

    y_p, sum_ww, sum_logq = pl.pallas_call(
        bayesian_linear_kernel,
        out_shape=(
            jax.ShapeDtypeStruct((B, out_p), jnp.float32),
            jax.ShapeDtypeStruct((1,), jnp.float32),
            jax.ShapeDtypeStruct((1,), jnp.float32),
        ),
        grid_spec=pltpu.PrefetchScalarGridSpec(
            num_scalar_prefetch=0,
            grid=(ni, nk),
            in_specs=[
                pl.BlockSpec((B, tile_in), lambda i, k: (0, k)),           # x
                pl.BlockSpec((tile_out, tile_in), lambda i, k: (i, k)),    # mu
                pl.BlockSpec((tile_out, tile_in), lambda i, k: (i, k)),    # rho
                pl.BlockSpec((tile_out, tile_in), lambda i, k: (i, k)),    # eps
            ],
            out_specs=(
                pl.BlockSpec((B, tile_out), lambda i, k: (0, i)),          # y
                pl.BlockSpec((1,), lambda i, k: (0,),
                             memory_space=pltpu.MemorySpace.SMEM),         # sum(w^2)
                pl.BlockSpec((1,), lambda i, k: (0,),
                             memory_space=pltpu.MemorySpace.SMEM),         # sum(log s + e^2/2)
            ),
            scratch_shapes=[
                pltpu.SMEM((1,), jnp.float32),
                pltpu.SMEM((1,), jnp.float32),
            ],
        ),
        compiler_params=pltpu.CompilerParams(
            dimension_semantics=("arbitrary", "arbitrary")),
    )(x_p, mu_p, rho_p, eps_p)

    y = y_p[:, :out_f]

    # Hoisted constant terms (computed once, outside the kernel).
    n = out_f * in_f
    sigma_p = jax.nn.softplus(prior_rho.reshape(-1)[0])
    log_prior = (-n * LOG_SQRT_2PI - n * jnp.log(sigma_p)
                 - sum_ww[0] / (2.0 * sigma_p * sigma_p))
    log_var_post = -n * LOG_SQRT_2PI - sum_logq[0]
    return y, log_prior, log_var_post


def _reference(x, mu, rho, eps, prior_rho):
    """Literal translation of the PyTorch module's math."""
    sigma = jnp.log1p(jnp.exp(rho))
    w = mu + sigma * eps
    y = jnp.dot(x, w.T, precision=lax.Precision.HIGHEST)
    sigma_p = jnp.log1p(jnp.exp(prior_rho[0, 0]))
    logp = jnp.sum(-LOG_SQRT_2PI - jnp.log(sigma_p) - w ** 2 / (2 * sigma_p ** 2))
    logq = jnp.sum(-LOG_SQRT_2PI - jnp.log(sigma) - (w - mu) ** 2 / (2 * sigma ** 2))
    return y, logp, logq


if __name__ == "__main__":
    # Small, deliberately non-tile-aligned shapes: exercises padding and a (2, 2)
    # grid (multi-tile accumulation over both out_features and in_features).
    B, in_features, out_features = 8, 200, 150
    key = jax.random.PRNGKey(0)
    k_x, k_mu, k_rho, k_eps = jax.random.split(key, 4)

    x = jax.random.normal(k_x, (B, in_features), dtype=jnp.float32)
    weight_mu = 0.1 * jax.random.normal(k_mu, (out_features, in_features),
                                        dtype=jnp.float32)
    weight_rho = 0.1 * jax.random.normal(k_rho, (out_features, in_features),
                                         dtype=jnp.float32)
    # epsilon ~ Normal(0, 1) sampled host-side (deterministic) and passed in.
    eps = jax.random.normal(k_eps, (out_features, in_features), dtype=jnp.float32)
    # SIGMA_1 = FloatTensor([0]) -> prior rho is 0.
    prior_rho = jnp.zeros((1, 1), dtype=jnp.float32)

    y, log_prior, log_var_post = bayesian_linear_forward(
        x, weight_mu, weight_rho, eps, prior_rho, tile_out=128, tile_in=128)
    jax.block_until_ready((y, log_prior, log_var_post))

    y_ref, logp_ref, logq_ref = _reference(x, weight_mu, weight_rho, eps, prior_rho)
    np.testing.assert_allclose(np.asarray(y), np.asarray(y_ref),
                               rtol=1e-4, atol=1e-3)
    np.testing.assert_allclose(np.asarray(log_prior), np.asarray(logp_ref),
                               rtol=1e-4, atol=1e-2)
    np.testing.assert_allclose(np.asarray(log_var_post), np.asarray(logq_ref),
                               rtol=1e-4, atol=1e-2)
    print("KERNEL_OK")
</pallas_src>

<mosaic_0001>
module attributes {stable_mosaic.version = 11 : i64} {
  func.func @bayesian_linear_kernel(%arg0: i32, %arg1: i32, %arg2: memref<8x128xf32, #tpu.memory_space<vmem>>, %arg3: memref<128x128xf32, #tpu.memory_space<vmem>>, %arg4: memref<128x128xf32, #tpu.memory_space<vmem>>, %arg5: memref<128x128xf32, #tpu.memory_space<vmem>>, %arg6: memref<8x128xf32, #tpu.memory_space<vmem>>, %arg7: memref<1xf32, #tpu.memory_space<smem>>, %arg8: memref<1xf32, #tpu.memory_space<smem>>, %arg9: memref<1xf32, #tpu.memory_space<smem>>, %arg10: memref<1xf32, #tpu.memory_space<smem>>) attributes {dimension_semantics = [#tpu.dimension_semantics<arbitrary>, #tpu.dimension_semantics<arbitrary>], iteration_bounds = array<i64: 2, 2>, scalar_prefetch = 0 : i64, scratch_operands = 2 : i64, tpu.core_type = #tpu.core_type<tc>, window_params = [{transform_indices = @transform_0, window_bounds = array<i64: 8, 128>}, {transform_indices = @transform_1, window_bounds = array<i64: 128, 128>}, {transform_indices = @transform_2, window_bounds = array<i64: 128, 128>}, {transform_indices = @transform_3, window_bounds = array<i64: 128, 128>}, {transform_indices = @transform_4, window_bounds = array<i64: 8, 128>}, {transform_indices = @transform_5, window_bounds = array<i64: 1>}, {transform_indices = @transform_6, window_bounds = array<i64: 1>}]} {
    %c0 = arith.constant 0 : index
    %c0_0 = arith.constant 0 : index
    %0 = vector.load %arg3[%c0, %c0_0] : memref<128x128xf32, #tpu.memory_space<vmem>>, vector<128x128xf32>
    %c0_1 = arith.constant 0 : index
    %c0_2 = arith.constant 0 : index
    %1 = vector.load %arg4[%c0_1, %c0_2] : memref<128x128xf32, #tpu.memory_space<vmem>>, vector<128x128xf32>
    %c0_3 = arith.constant 0 : index
    %c0_4 = arith.constant 0 : index
    %2 = vector.load %arg5[%c0_3, %c0_4] : memref<128x128xf32, #tpu.memory_space<vmem>>, vector<128x128xf32>
    %cst = arith.constant 0.000000e+00 : f32
    %3 = vector.broadcast %cst : f32 to vector<128x128xf32>
    %4 = arith.maximumf %1, %3 : vector<128x128xf32>
    %5 = vector.broadcast %cst : f32 to vector<128x128xf32>
    %6 = arith.subf %1, %5 : vector<128x128xf32>
    %7 = arith.cmpf one, %6, %6 : vector<128x128xf32>
    %8 = vector.broadcast %cst : f32 to vector<128x128xf32>
    %9 = arith.addf %1, %8 : vector<128x128xf32>
    %10 = math.absf %6 : vector<128x128xf32>
    %cst_5 = arith.constant 0.000000e+00 : f32
    %11 = vector.broadcast %cst_5 : f32 to vector<128x128xf32>
    %12 = arith.subf %11, %10 : vector<128x128xf32>
    %13 = math.exp %12 : vector<128x128xf32>
    %14 = math.log1p %13 : vector<128x128xf32>
    %15 = arith.addf %4, %14 : vector<128x128xf32>
    %16 = arith.select %7, %9, %15 : vector<128x128xi1>, vector<128x128xf32>
    %17 = arith.mulf %16, %2 : vector<128x128xf32>
    %18 = arith.addf %0, %17 : vector<128x128xf32>
    %c0_6 = arith.constant 0 : index
    %c0_7 = arith.constant 0 : index
    %19 = vector.load %arg2[%c0_6, %c0_7] : memref<8x128xf32, #tpu.memory_space<vmem>>, vector<8x128xf32>
    %cst_8 = arith.constant dense<0.000000e+00> : vector<8x128xf32>
    %20 = tpu.matmul %19, %18, %cst_8 {dimension_numbers = #tpu.dot_dimension_numbers<[1], [1], [0], [0], [0, 0, 1, 0], [], []>} : vector<8x128xf32>, vector<128x128xf32>, vector<8x128xf32> -> vector<8x128xf32>
    %c0_i32 = arith.constant 0 : i32
    %21 = arith.cmpi eq, %arg1, %c0_i32 : i32
    %22 = arith.extui %21 : i1 to i32
    %c0_i32_9 = arith.constant 0 : i32
    %23 = arith.cmpi ne, %22, %c0_i32_9 : i32
    scf.if %23 {
      %cst_26 = arith.constant 0.000000e+00 : f32
      %57 = vector.broadcast %cst_26 : f32 to vector<8x128xf32>
      %c0_27 = arith.constant 0 : index
      %c0_28 = arith.constant 0 : index
      %58 = vector.load %arg6[%c0_27, %c0_28] : memref<8x128xf32, #tpu.memory_space<vmem>>, vector<8x128xf32>
      tpu.vector_store %arg6[%c0_27, %c0_28], %57 {strides = array<i32>} : memref<8x128xf32, #tpu.memory_space<vmem>>, vector<8x128xf32>,
    } else {
    }
    %c0_10 = arith.constant 0 : index
    %c0_11 = arith.constant 0 : index
    %24 = vector.load %arg6[%c0_10, %c0_11] : memref<8x128xf32, #tpu.memory_space<vmem>>, vector<8x128xf32>
    %25 = arith.addf %24, %20 : vector<8x128xf32>
    %c0_12 = arith.constant 0 : index
    %c0_13 = arith.constant 0 : index
    %26 = vector.load %arg6[%c0_12, %c0_13] : memref<8x128xf32, #tpu.memory_space<vmem>>, vector<8x128xf32>
    tpu.vector_store %arg6[%c0_12, %c0_13], %25 {strides = array<i32>} : memref<8x128xf32, #tpu.memory_space<vmem>>, vector<8x128xf32>,
    %27 = arith.mulf %18, %18 : vector<128x128xf32>
    %28 = vector.shape_cast %27 : vector<128x128xf32> to vector<1x128x128xf32>
    %cst_14 = arith.constant dense<0.000000e+00> : vector<1xf32>
    %29 = vector.multi_reduction <add>, %28, %cst_14 [1, 2] : vector<1x128x128xf32> to vector<1xf32>
    %30 = vector.shape_cast %29 : vector<1xf32> to vector<1x1x1xf32>
    %31 = vector.extract %30[0, 0, 0] : f32 from vector<1x1x1xf32>
    %32 = math.log %16 : vector<128x128xf32>
    %33 = arith.mulf %2, %2 : vector<128x128xf32>
    %cst_15 = arith.constant 5.000000e-01 : f32
    %34 = vector.broadcast %cst_15 : f32 to vector<128x128xf32>
    %35 = arith.mulf %34, %33 : vector<128x128xf32>
    %36 = arith.addf %32, %35 : vector<128x128xf32>
    %37 = vector.shape_cast %36 : vector<128x128xf32> to vector<1x128x128xf32>
    %cst_16 = arith.constant dense<0.000000e+00> : vector<1xf32>
    %38 = vector.multi_reduction <add>, %37, %cst_16 [1, 2] : vector<1x128x128xf32> to vector<1xf32>
    %39 = vector.shape_cast %38 : vector<1xf32> to vector<1x1x1xf32>
    %40 = vector.extract %39[0, 0, 0] : f32 from vector<1x1x1xf32>
    %c0_i32_17 = arith.constant 0 : i32
    %41 = arith.cmpi eq, %arg0, %c0_i32_17 : i32
    %c0_i32_18 = arith.constant 0 : i32
    %42 = arith.cmpi eq, %arg1, %c0_i32_18 : i32
    %43 = arith.andi %41, %42 : i1
    %44 = arith.extui %43 : i1 to i32
    %c0_i32_19 = arith.constant 0 : i32
    %45 = arith.cmpi ne, %44, %c0_i32_19 : i32
    scf.if %45 {
      %cst_26 = arith.constant 0.000000e+00 : f32
      %c0_27 = arith.constant 0 : index
      %57 = memref.load %arg9[%c0_27] : memref<1xf32, #tpu.memory_space<smem>>
      memref.store %cst_26, %arg9[%c0_27] : memref<1xf32, #tpu.memory_space<smem>>
      %cst_28 = arith.constant 0.000000e+00 : f32
      %c0_29 = arith.constant 0 : index
      %58 = memref.load %arg10[%c0_29] : memref<1xf32, #tpu.memory_space<smem>>
      memref.store %cst_28, %arg10[%c0_29] : memref<1xf32, #tpu.memory_space<smem>>
    } else {
    }
    %c0_20 = arith.constant 0 : index
    %46 = memref.load %arg9[%c0_20] : memref<1xf32, #tpu.memory_space<smem>>
    %47 = arith.addf %46, %31 : f32
    %c0_21 = arith.constant 0 : index
    %48 = memref.load %arg9[%c0_21] : memref<1xf32, #tpu.memory_space<smem>>
    memref.store %47, %arg9[%c0_21] : memref<1xf32, #tpu.memory_space<smem>>
    %c0_22 = arith.constant 0 : index
    %49 = memref.load %arg10[%c0_22] : memref<1xf32, #tpu.memory_space<smem>>
    %50 = arith.addf %49, %40 : f32
    %c0_23 = arith.constant 0 : index
    %51 = memref.load %arg10[%c0_23] : memref<1xf32, #tpu.memory_space<smem>>
    memref.store %50, %arg10[%c0_23] : memref<1xf32, #tpu.memory_space<smem>>
    %c1_i32 = arith.constant 1 : i32
    %52 = arith.cmpi eq, %arg0, %c1_i32 : i32
    %c1_i32_24 = arith.constant 1 : i32
    %53 = arith.cmpi eq, %arg1, %c1_i32_24 : i32
    %54 = arith.andi %52, %53 : i1
    %55 = arith.extui %54 : i1 to i32
    %c0_i32_25 = arith.constant 0 : i32
    %56 = arith.cmpi ne, %55, %c0_i32_25 : i32
    scf.if %56 {
      %c0_26 = arith.constant 0 : index
      %57 = memref.load %arg9[%c0_26] : memref<1xf32, #tpu.memory_space<smem>>
      %c0_27 = arith.constant 0 : index
      %58 = memref.load %arg7[%c0_27] : memref<1xf32, #tpu.memory_space<smem>>
      memref.store %57, %arg7[%c0_27] : memref<1xf32, #tpu.memory_space<smem>>
      %c0_28 = arith.constant 0 : index
      %59 = memref.load %arg10[%c0_28] : memref<1xf32, #tpu.memory_space<smem>>
      %c0_29 = arith.constant 0 : index
      %60 = memref.load %arg8[%c0_29] : memref<1xf32, #tpu.memory_space<smem>>
      memref.store %59, %arg8[%c0_29] : memref<1xf32, #tpu.memory_space<smem>>
    } else {
    }
    return
  }
  func.func @transform_0(%arg0: i32, %arg1: i32) -> (i32, i32) {
    %c0_i32 = arith.constant 0 : i32
    %c0_i32_0 = arith.constant 0 : i32
    return %c0_i32, %arg1 : i32, i32
  }
  func.func @transform_1(%arg0: i32, %arg1: i32) -> (i32, i32) {
    %c0_i32 = arith.constant 0 : i32
    return %arg0, %arg1 : i32, i32
  }
  func.func @transform_2(%arg0: i32, %arg1: i32) -> (i32, i32) {
    %c0_i32 = arith.constant 0 : i32
    return %arg0, %arg1 : i32, i32
  }
  func.func @transform_3(%arg0: i32, %arg1: i32) -> (i32, i32) {
    %c0_i32 = arith.constant 0 : i32
    return %arg0, %arg1 : i32, i32
  }
  func.func @transform_4(%arg0: i32, %arg1: i32) -> (i32, i32) {
    %c0_i32 = arith.constant 0 : i32
    %c0_i32_0 = arith.constant 0 : i32
    return %c0_i32, %arg0 : i32, i32
  }
  func.func @transform_5(%arg0: i32, %arg1: i32) -> i32 {
    %c0_i32 = arith.constant 0 : i32
    %c0_i32_0 = arith.constant 0 : i32
    return %c0_i32 : i32
  }
  func.func @transform_6(%arg0: i32, %arg1: i32) -> i32 {
    %c0_i32 = arith.constant 0 : i32
    %c0_i32_0 = arith.constant 0 : i32
    return %c0_i32 : i32
  }
}

</mosaic_0001>

<bundles_post_ra>
// kernel: tpu_custom_call.1
= control target key start
LH: loop header
LB: loop body
LE: loop exit
PB: predicated region body
PF: predicated region fallthrough
CT: control target
= control target key end

     0   :  { %s3056_s0 = inlined_call_operand.hbm [shape: f32[8,256], index: 0, kind: input, shape index: {}]   ;;  %s3057_s1 = inlined_call_operand.hbm [shape: f32[256,256], index: 1, kind: input, shape index: {}]   ;;  %s3058_s2 = inlined_call_operand.hbm [shape: f32[256,256], index: 2, kind: input, shape index: {}]   ;;  %s3059_s3 = inlined_call_operand.hbm [shape: f32[256,256], index: 3, kind: input, shape index: {}]   ;;  %s3060_s4 = inlined_call_operand.hbm [shape: f32[8,256], index: 4, kind: output, shape index: {0}]   ;;  %s3061_s5 = inlined_call_operand.hbm [shape: f32[1], index: 5, kind: output, shape index: {1}]   ;;  %s3062_s6 = inlined_call_operand.hbm [shape: f32[1], index: 6, kind: output, shape index: {2}]  }
   0x1   :  { %3096 = sst [smem:[#allocation38_spill]] %s3057_s1 }
   0x2   :  { %3097 = sst [smem:[#allocation39_spill]] %s3060_s4 }
   0x3   :  { %3098 = sst [smem:[#allocation40_spill]] %s3061_s5 }
   0x4   :  { %3099 = sst [smem:[#allocation41_spill]] %s3062_s6 }
   0x5   :  { %12 = vsyncpa [#allocation5], 0 }
   0x6   :  { %14 = vsyncpa [#allocation5 + $0x1], 0 }
   0x7   :  { %15 = vsyncpa [#allocation9], 0 }
   0x8   :  { %17 = vsyncpa [#allocation9 + $0x1], 0 }
   0x9   :  { %18 = vsyncpa [#allocation12], 0 }
   0xa   :  { %20 = vsyncpa [#allocation12 + $0x1], 0 }
   0xb   :  { %21 = vsyncpa [#allocation6], 0 }
   0xc   :  { %23 = vsyncpa [#allocation6 + $0x1], 0 }
   0xd   :  { %24 = vsyncpa [#allocation7], 0 }
   0xe   :  { %25 = vsyncpa [#allocation16], 0  ;;  %s1977_s21 = smov 0   ;;  %s1979_s22 = smov 0  }
   0xf   :  { %s1981_s23 = smov 0   ;;  %s1983_s24 = smov 0  }
  0x10   :  { %s1985_s25 = smov 0   ;;  %s1987_s26 = smov 0  }
  0x11   :  { %s1989_s27 = smov 0   ;;  %s1991_s28 = smov 0  }
  0x12   :  { %s1993_s29 = smov 0   ;;  %s1995_s30 = smov 0  }
  0x13   :  { %s1997_s7 = smov 0   ;;  %s1999_s8 = smov 0  }
  0x14   :  { %s2001_s9 = smov 0   ;;  %s2003_s10 = smov 0  }
  0x15 LB: > { %3100 = sst [smem:[#allocation23_spill]] %s1881_s23  ;;  %p3069_p0 = scmp.eq.s32.totalorder %s1925_s10, 0  ;;  %s1925_s10 = sphi %s2003_s10, %s31_s10   ;;  %s1921_s9 = sphi %s2001_s9, %s3203_s9   ;;  %s1917_s8 = sphi %s1999_s8, %s3202_s8   ;;  %s1913_s7 = sphi %s1997_s7, %s3201_s7   ;;  %s1909_s30 = sphi %s1995_s30, %s3200_s30   ;;  %s1905_s29 = sphi %s1993_s29, %s3199_s29   ;;  %s1901_s28 = sphi %s1991_s28, %s3198_s28   ;;  %s1897_s27 = sphi %s1989_s27, %s3197_s27   ;;  %s1893_s26 = sphi %s1987_s26, %s3207_s26   ;;  %s1889_s25 = sphi %s1985_s25, %s3206_s25   ;;  %s1885_s24 = sphi %s1983_s24, %s3195_s24   ;;  %s1881_s23 = sphi %s1981_s23, %s3194_s23   ;;  %s1877_s22 = sphi %s1979_s22, %s3205_s22   ;;  %s1873_s21 = sphi %s1977_s21, %s3204_s21  }
  0x16   : > { %3101 = sst [smem:[#allocation24_spill]] %s1889_s25  ;;  %p85_p1 = scmp.ne.s32.totalorder %s1893_s26, %s1889_s25 }
  0x17   : > { %3102 = sst [smem:[#allocation25_spill]] %s1901_s28  ;;  %p3068_p2 = scmp.lt.s32.totalorder %s1925_s10, 4 }
  0x18   : > { %3103 = sst [smem:[#allocation26_spill]] %s1905_s29  ;;  %p87_p3 = por %p85_p1, %p3069_p0 }
  0x19   : > { %3104 = sst [smem:[#allocation27_spill]] %s1909_s30  ;;  %s257_s13 = sand.u32 1, %s1925_s10  }
  0x1a   : > { %3105 = sst [smem:[#allocation28_spill]] %s1913_s7  ;;  %s3064_s14 = sand.u32 1, %s1893_s26  }
  0x1b   : > { %3106 = sst [smem:[#allocation29_spill]] %s1917_s8  ;;  %s2059_s15 = sshll.u32 %s3064_s14, 7 }
  0x1c   : > { %3107 = sst [smem:[#allocation30_spill]] %s1921_s9  ;;  %s1271_s16 = sshll.u32 %s1921_s9, 5 }
  0x1d   : > { %s267_s17 = sadd.s32 %s1917_s8, %s1271_s16  ;;  %s261_s19 = scalar_lea.vmem [#allocation8], %s2059_s15 }
  0x1e   : > { %s2063_s18 = sshll.u32 %s267_s17, 7  ;;  %s270_s20 = sshll.u32 %s261_s19, 4  ;;  %s2072_s20 = int_to_ptr.vmem [resolvable:$true] %s270_s20 }
  0x1f   : > { %s3108_s1 = sld [smem:[#allocation38_spill]]  ;;  %p2076_p4 = pnand %p3068_p2, %p87_p3 }
  0x20   : > { %s2081_s16 = scalar_lea.sflag [#allocation9], %s257_s13 }
  0x21   : > { %s3109_s14 = scalar_select %p2076_p4, 1, 0 }
  0x22   : > { %p2087_p7 = pneg %p2076_p4 }
  0x25   : > { %s2070_s12 = scalar_lea.hbm %s3108_s1, %s2063_s18  ;;  %s1624_s5 = scalar_lea.hbm %s3108_s1, 8192 }
  0x26   : > { %s1619_s17 = scalar_lea.hbm %s2070_s12, 2048  ;;  %p1625_p10 = scmp.lt.u32.totalorder %s2070_s12, %s3108_s1 }
  0x27   : > { %p1620_p6 = scmp.ne.s32.totalorder %s2070_s12, %s1619_s17  ;;  %p1626_p11 = scmp.lt.u32.totalorder %s1624_s5, %s1619_s17 }
  0x28   : > { %p1628_p13 = scmp.lt.u32.totalorder %s1619_s17, %s2070_s12 }
  0x29   : > { %p1622_p8 = pnand %p2087_p7, %p1620_p6  ;;  %p1627_p12 = por %p1626_p11, %p1625_p10 }
  0x2b   : > { %p1623_p9 = pneg %p1622_p8  ;;  %p1629_p1 = por %p1628_p13, %p1627_p12 }
  0x2d   : > { %p1630_p3 = pnand %p1629_p1, %p1623_p9 }
  0x2f   : > { %1633 = shalt.err (!%p1630_p3)
}
  0x30   : > { %s1634_s13 = scalar_lea.vmem %s2072_s20, 2048  ;;  %s1927_s11 = smov [#allocation8]  }
  0x31   : > { %p1635_p6 = scmp.ne.s32.totalorder %s2072_s20, %s1634_s13  ;;  %s1639_s19 = sshll.u32 %s1927_s11, 4  ;;  %s1640_s19 = int_to_ptr.vmem [resolvable:$false] %s1639_s19 }
  0x32   : > { %s1641_s4 = scalar_lea.vmem %s1640_s19, 4096  ;;  %p1642_p0 = scmp.lt.s32.totalorder %s2072_s20, %s1640_s19 }
  0x33   : > { %p1637_p8 = pnand %p1635_p6, %p2087_p7  ;;  %p1643_p5 = scmp.lt.s32.totalorder %s1641_s4, %s1634_s13 }
  0x35   : > { %p1638_p2 = pneg %p1637_p8  ;;  %p1644_p10 = por %p1643_p5, %p1642_p0 }
  0x37   : > { %p1645_p11 = pnand %p1644_p10, %p1638_p2 }
  0x39   : > { %1648 = shalt.err (!%p1645_p11)
}
  0x3a   : > { %s3070_s5 = smov 256   ;;  %s3072_s7 = smov 128  }
  0x3b   : > { %s3074_s17 = smov 8   ;;  %p324_p0 = scmp.lt.s32.totalorder %s1925_s10, 5 }
  0x3c   : > { %1384 = dma.hbm_to_vmem [thread:$0]  (!%p2076_p4), %s2070_s12, 2048, %s2072_s20, %s2081_s16, %s3070_s5, %s3072_s7, %s3074_s17  }
  0x3d   : > { %p3111_p2 = scmp.ge.s32.totalorder %s1925_s10, 1  ;;  %s2122_s11 = sadd.s32 4294967295, %s1925_s10  }
  0x3e   : > { %s1239_s19 = sadd.s32 4294967294, %s1925_s10   ;;  %s40_s4 = sadd.s32 1, %s1917_s8 }
  0x3f   : > { %p2117_p5 = pnand %p3111_p2, %p324_p0  ;;  %s50_s1 = sadd.s32 1, %s1905_s29 }
  0x40   : > { %p41_p9 = scmp.ge.s32.totalorder %s40_s4, 2  ;;  %p57_p12 = scmp.ne.s32.totalorder %s1905_s29, %s1901_s28 }
  0x41   : > { %s3112_s13 = scalar_select %p2117_p5, 1, 0 }
  0x42   : > { %p63_p13 = scmp.ne.s32.totalorder %s1901_s28, %s1897_s27  ;;  %p64_p1 = scmp.eq.s32.totalorder %s2122_s11, 0 }
  0x43   : > { %s3209_s4 = smov (%p41_p9, %s40_s4), 0  ;;  %s3114_s12 = sadd.s32 1, %s1921_s9 }
  0x44   : > { %3113 = sst [smem:[#allocation31_spill]] %s3209_s4  ;;  %s3211_s12 = smov (!%p41_p9, %s3114_s12), %s1921_s9 }
  0x45   : > { %s47_s20 = ssub.s32 %s1917_s8, %s3209_s4  ;;  %p3115_p3 = scmp.eq.s32.totalorder %s1925_s10, 0 }
  0x46   : > { %p45_p8 = scmp.ge.s32.totalorder %s3211_s12, 2  ;;  %p48_p10 = scmp.eq.s32.totalorder %s47_s20, 0 }
  0x47   : > { %p2141_p6 = por %p3115_p3, %p57_p12  ;;  %p2145_p11 = por %p64_p1, %p63_p13 }
  0x48   : > { %p91_p0 = scmp.ne.s32.totalorder %s1889_s25, %s1885_s24  ;;  %s3213_s12 = smov (%p45_p8, %s3211_s12), 0 }
  0x49   : > { %s3117_s27 = scalar_select %p2145_p11, 1, 0 }
  0x4a   : > { %3119 = sst [smem:[#allocation33_spill]] %s3213_s12  ;;  %s73_s17 = ssub.s32 %s1921_s9, %s3213_s12 }
  0x4b   : > { %3118 = sst [smem:[#allocation32_spill]] %s3117_s27  ;;  %p2158_p2 = por %p91_p0, %p64_p1 }
  0x4c   : > { %s2154_s7 = scalar_select %p48_p10, %s1905_s29, %s50_s1  }
  0x4d   : > { %s3121_s4 = scalar_select %p2158_p2, 1, 0 }
  0x4e   : > { %3120 = sst [smem:[#allocation34_spill]] %s2154_s7  ;;  %s75_s30 = sor.u32 %s73_s17, %s47_s20 }
  0x4f   : > { %p158_p9 = scmp.eq.s32.totalorder %s73_s17, 0  ;;  %p76_p12 = scmp.eq.s32.totalorder %s75_s30, 0 }
  0x50   : > { %s160_s27 = sadd.s32 1, %s1881_s23  ;;  %s3123_s24 = sadd.s32 1, %s1893_s26 }
  0x51   : > { %s2164_s28 = scalar_select %p158_p9, %s1881_s23, %s160_s27  }
  0x52   : > { %s2169_s25 = scalar_select %p76_p12, %s1893_s26, %s3123_s24  }
  0x53   : > { %3122 = sst [smem:[#allocation35_spill]] %s2164_s28  ;;  %p170_p13 = scmp.ne.s32.totalorder %s1881_s23, %s1877_s22 }
  0x54   : > { %3124 = sst [smem:[#allocation36_spill]] %s2169_s25  ;;  %p3088_p3 = scmp.eq.s32.totalorder %s2122_s11, 3 }
  0x55   : > { %p176_p8 = scmp.ne.s32.totalorder %s1877_s22, %s1873_s21  ;;  %p177_p10 = scmp.eq.s32.totalorder %s1239_s19, 3 }
  0x56   : > { %p2178_p1 = por %p3088_p3, %p170_p13  ;;  %s239_s17 = sand.u32 1, %s1905_s29  }
  0x57   : > { %p2183_p0 = por %p177_p10, %p176_p8  ;;  %s1242_s20 = sshll.u32 %s239_s17, 3 }
  0x58   : > { %s3125_s1 = scalar_select %p2178_p1, 1, 0 }
  0x59   : > { %s3126_s30 = scalar_select %p2183_p0, 1, 0 }
  0x5a   : > { %s1243_s27 = sshll.u32 %s1917_s8, 7  ;;  %s243_s19 = scalar_lea.vmem [#allocation4], %s1242_s20 }
  0x5b   : > { %s2191_s24 = scalar_lea.hbm %s3056_s0, %s1243_s27  ;;  %s250_s7 = sshll.u32 %s243_s19, 4  ;;  %s2201_s7 = int_to_ptr.vmem [resolvable:$true] %s250_s7 }
  0x5c   : > { %p3127_p9 = scmp.lt.s32.totalorder %s1925_s10, 4  ;;  %s2207_s12 = scalar_lea.hbm %s3058_s2, %s2063_s18 }
  0x5d   : > { %s240_s27 = scalar_lea.sflag [#allocation5], %s239_s17  ;;  %s1649_s25 = scalar_lea.hbm %s2191_s24, 128 }
  0x5e   : > { %p2197_p12 = pnand %p3127_p9, %p2141_p6  ;;  %p1650_p13 = scmp.ne.s32.totalorder %s2191_s24, %s1649_s25 }
  0x5f   : > { %s1654_s19 = scalar_lea.hbm %s3056_s0, 256  ;;  %p1655_p9 = scmp.lt.u32.totalorder %s2191_s24, %s3056_s0 }
  0x60   : > { %p1651_p8 = pneg %p2197_p12  ;;  %p1656_p3 = scmp.lt.u32.totalorder %s1654_s19, %s1649_s25 }
  0x61   : > { %p1658_p1 = scmp.lt.u32.totalorder %s1649_s25, %s2191_s24 }
  0x62   : > { %p1652_p6 = pnand %p1651_p8, %p1650_p13  ;;  %p1657_p0 = por %p1656_p3, %p1655_p9 }
  0x64   : > { %p1653_p10 = pneg %p1652_p6  ;;  %p1659_p2 = por %p1658_p1, %p1657_p0 }
  0x66   : > { %p1660_p11 = pnand %p1659_p2, %p1653_p10 }
  0x68   : > { %1663 = shalt.err (!%p1660_p11)
}
  0x69   : > { %s1664_s8 = scalar_lea.vmem %s2201_s7, 128  ;;  %s1931_s17 = smov [#allocation4]  }
  0x6a   : > { %p1665_p13 = scmp.ne.s32.totalorder %s2201_s7, %s1664_s8  ;;  %s1669_s9 = sshll.u32 %s1931_s17, 4  ;;  %s1670_s9 = int_to_ptr.vmem [resolvable:$false] %s1669_s9 }
  0x6b   : > { %s1671_s23 = scalar_lea.vmem %s1670_s9, 256  ;;  %p1672_p4 = scmp.lt.s32.totalorder %s2201_s7, %s1670_s9 }
  0x6c   : > { %p1667_p6 = pnand %p1665_p13, %p1651_p8  ;;  %p1673_p3 = scmp.lt.s32.totalorder %s1671_s23, %s1664_s8 }
  0x6e   : > { %p1668_p5 = pneg %p1667_p6  ;;  %p1674_p9 = por %p1673_p3, %p1672_p4 }
  0x70   : > { %p1675_p1 = pnand %p1674_p9, %p1668_p5 }
  0x72   : > { %1678 = shalt.err (!%p1675_p1)
}
  0x73   : > { %1381 = dma.hbm_to_vmem [thread:$0]  (!%p2197_p12), %s2191_s24, 128, %s2201_s7, %s240_s27  }
  0x74   : > { %s284_s25 = scalar_lea.vmem [#allocation10], %s2059_s15  ;;  %s1679_s5 = scalar_lea.hbm %s2207_s12, 2048 }
  0x75   : > { %s293_s28 = sshll.u32 %s284_s25, 4  ;;  %p1680_p11 = scmp.ne.s32.totalorder %s2207_s12, %s1679_s5  ;;  %s2235_s28 = int_to_ptr.vmem [resolvable:$true] %s293_s28 }
  0x76   : > { %s1684_s19 = scalar_lea.hbm %s3058_s2, 8192  ;;  %p1685_p2 = scmp.lt.u32.totalorder %s2207_s12, %s3058_s2 }
  0x77   : > { %p1682_p4 = pnand %p1680_p11, %p2087_p7  ;;  %p1686_p0 = scmp.lt.u32.totalorder %s1684_s19, %s1679_s5 }
  0x78   : > { %p1688_p12 = scmp.lt.u32.totalorder %s1679_s5, %s2207_s12 }
  0x79   : > { %p1683_p5 = pneg %p1682_p4  ;;  %p1687_p8 = por %p1686_p0, %p1685_p2 }
  0x7b   : > { %p1689_p10 = por %p1688_p12, %p1687_p8 }
  0x7d   : > { %p1690_p13 = pnand %p1689_p10, %p1683_p5 }
  0x7f   : > { %1693 = shalt.err (!%p1690_p13)
}
  0x80   : > { %s1694_s7 = scalar_lea.vmem %s2235_s28, 2048  ;;  %s1932_s24 = smov [#allocation10]  }
  0x81   : > { %p1695_p6 = scmp.ne.s32.totalorder %s2235_s28, %s1694_s7  ;;  %s1699_s27 = sshll.u32 %s1932_s24, 4  ;;  %s1700_s27 = int_to_ptr.vmem [resolvable:$false] %s1699_s27 }
  0x82   : > { %s1701_s9 = scalar_lea.vmem %s1700_s27, 4096  ;;  %p1702_p1 = scmp.lt.s32.totalorder %s2235_s28, %s1700_s27 }
  0x83   : > { %p1697_p3 = pnand %p1695_p6, %p2087_p7  ;;  %p1703_p11 = scmp.lt.s32.totalorder %s1701_s9, %s1694_s7 }
  0x85   : > { %p1698_p9 = pneg %p1697_p3  ;;  %p1704_p4 = por %p1703_p11, %p1702_p1 }
  0x87   : > { %p1705_p2 = pnand %p1704_p4, %p1698_p9 }
  0x89   : > { %1708 = shalt.err (!%p1705_p2)
}
  0x8a   : > { %p3129_p5 = scmp.ne.s32.totalorder %s3109_s14, 0  ;;  %s3130_s23 = smov 8  }
  0x8b   : > { %s3131_s25 = smov 128   ;;  %s3132_s5 = smov 256  }
  0x8c   : > { %1387 = dma.hbm_to_vmem [thread:$0]  (!%p3129_p5), %s2207_s12, 2048, %s2235_s28, %s2081_s16, %s3132_s5, %s3131_s25, %s3130_s23  }
  0x8d   : > { %s2266_s19 = scalar_lea.hbm %s3059_s3, %s2063_s18  ;;  %s307_s8 = scalar_lea.vmem [#allocation11], %s2059_s15 }
  0x8e   : > { %s316_s17 = sshll.u32 %s307_s8, 4  ;;  %s3133_s7 = sand.u32 1, %s1893_s26   ;;  %s2269_s17 = int_to_ptr.vmem [resolvable:$true] %s316_s17 }
  0x8f   : > { %s2273_s24 = scalar_lea.sflag [#allocation12], %s3133_s7  ;;  %s1709_s27 = scalar_lea.hbm %s2266_s19, 2048 }
  0x90   : > { %p1710_p0 = scmp.ne.s32.totalorder %s2266_s19, %s1709_s27  ;;  %s1714_s18 = scalar_lea.hbm %s3059_s3, 8192 }
  0x91   : > { %p1715_p10 = scmp.lt.u32.totalorder %s2266_s19, %s3059_s3  ;;  %p1716_p13 = scmp.lt.u32.totalorder %s1714_s18, %s1709_s27 }
  0x92   : > { %p1712_p8 = pnand %p1710_p0, %p2087_p7  ;;  %p1718_p3 = scmp.lt.u32.totalorder %s1709_s27, %s2266_s19 }
  0x93   : > { %p1717_p6 = por %p1716_p13, %p1715_p10 }
  0x94   : > { %p1713_p12 = pneg %p1712_p8 }
  0x95   : > { %p1719_p9 = por %p1718_p3, %p1717_p6 }
  0x97   : > { %p1720_p1 = pnand %p1719_p9, %p1713_p12 }
  0x99   : > { %1723 = shalt.err (!%p1720_p1)
}
  0x9a   : > { %s1724_s15 = scalar_lea.vmem %s2269_s17, 2048  ;;  %s1933_s20 = smov [#allocation11]  }
  0x9b   : > { %p1725_p11 = scmp.ne.s32.totalorder %s2269_s17, %s1724_s15  ;;  %s1729_s29 = sshll.u32 %s1933_s20, 4  ;;  %s1730_s29 = int_to_ptr.vmem [resolvable:$false] %s1729_s29 }
  0x9c   : > { %s1731_s8 = scalar_lea.vmem %s1730_s29, 4096  ;;  %p1732_p0 = scmp.lt.s32.totalorder %s2269_s17, %s1730_s29 }
  0x9d   : > { %p1727_p4 = pnand %p1725_p11, %p2087_p7  ;;  %p1733_p8 = scmp.lt.s32.totalorder %s1731_s8, %s1724_s15 }
  0x9f   : > { %p1728_p2 = pneg %p1727_p4  ;;  %p1734_p10 = por %p1733_p8, %p1732_p0 }
  0xa1   : > { %p1735_p13 = pnand %p1734_p10, %p1728_p2 }
  0xa3   : > { %1738 = shalt.err (!%p1735_p13)
}
  0xa4   : > { %1390 = dma.hbm_to_vmem [thread:$0]  (!%p3129_p5), %s2266_s19, 2048, %s2269_s17, %s2273_s24, %s3132_s5, %s3131_s25, %s3130_s23  }
  0xa5   : > { %p3134_p7 = scmp.ne.s32.totalorder %s3112_s13, 0 }
  0xa7   : > { %328 = sbr.rel (%p3134_p7) target bundleno = 788 (0x314), region = 36 }
  0xae   : > { %s3135_s6 = sld [smem:[#allocation25_spill]]  ;;  %s3136_s7 = sld [smem:[#allocation32_spill]] }
  0xb4   : > { %s330_s27 = sand.u32 1, %s3135_s6   ;;  %p3137_p12 = scmp.ne.s32.totalorder %s3136_s7, 0 }
  0xb5   : > { %s2303_s16 = sshll.u32 %s330_s27, 3  ;;  %s331_s12 = scalar_lea.sflag [#allocation5], %s330_s27 }
  0xb6   : > { %s334_s18 = scalar_lea.vmem [#allocation4], %s2303_s16 }
  0xb7   : > { %1848 = dma.done.wait (%p3137_p12), %s331_s12, 128  }
  0xb8   : > { %1850 = vsyncadd (%p3137_p12), %s331_s12, 4294967168  ;;  %s3138_s14 = sld [smem:[#allocation24_spill]]  ;;  %s339_s23 = sand.u32 1, %s2122_s11  }
  0xb9   : > { %s340_s5 = scalar_lea.sflag [#allocation9], %s339_s23  ;;  %p3139_p5 = scmp.ne.s32.totalorder %s3121_s4, 0 }
  0xbe   : > { %s341_s25 = sand.u32 1, %s3138_s14  }
  0xbf   : > { %s1258_s13 = sshll.u32 %s341_s25, 7 }
  0xc0   : > { %s2312_s19 = scalar_lea.vmem [#allocation8], %s1258_s13 }
  0xc1   : > { %1852 = dma.done.wait (%p3139_p5), %s340_s5, 4096  }
  0xc2   : > { %1854 = vsyncadd (%p3139_p5), %s340_s5, 4294963200  ;;  %s2318_s17 = scalar_lea.vmem [#allocation10], %s1258_s13  ;;  %s358_s24 = scalar_lea.sflag [#allocation12], %s341_s25 }
  0xc3   : > { %s2320_s28 = scalar_lea.vmem [#allocation11], %s1258_s13 }
  0xc4   : > { %1856 = dma.done.wait (%p3139_p5), %s358_s24, 2048  }
  0xc5   : > { %1858 = vsyncadd (%p3139_p5), %s358_s24, 4294965248  ;;  %s398_s9 = sand.u32 1, %s1877_s22   ;;  %v3094_v0 = vmov 0.0|0.0   ;;  %vm1935_vm0 = vmmov 0   ;;  %v1936_v1 = vmov 0.0   ;;  %v2333_v2 = vld [vmem:[%s2318_s17] sm:$0xff] }
  0xc6   : > { %s2329_s15 = sshll.u32 %s398_s9, 3  ;;  %1326 = vmatprep.subr.bf16.mxu0 %v3094_v0  ;;  %1323 = vmatprep.mubr.msk.f32.mxu0 %vm1935_vm0, %v1936_v1  ;;  %v2336_v3 = vld [vmem:[%s2318_s17 + $0x8] sm:$0xff]  ;;  %v504_v4 = vand.u32 2147483647, %v2333_v2  ;;  %v2341_v6 = vld [vmem:[%s2318_s17 + $0x10] sm:$0xff]  ;;  %v2344_v8 = vld [vmem:[%s2318_s17 + $0x18] sm:$0xff]  ;;  %vm472_vm3 = vcmp.ne.f32.partialorder %v2333_v2, %v2333_v2 }
  0xc7   : > { %v505_v5 = vand.u32 2147483647, %v2336_v3  ;;  %v506_v10 = vand.u32 2147483647, %v2341_v6  ;;  %v507_v12 = vand.u32 2147483647, %v2344_v8  ;;  %vm473_vm5 = vcmp.ne.f32.partialorder %v2336_v3, %v2336_v3 }
  0xc8   : > { %v520_v7 = vsub.f32 0.0, %v504_v4  ;;  %v2349_v13 = vld [vmem:[%s2318_s17 + $0x20] sm:$0xff]  ;;  %v2352_v14 = vld [vmem:[%s2318_s17 + $0x28] sm:$0xff]  ;;  %v2355_v18 = vld [vmem:[%s2318_s17 + $0x30] sm:$0xff]  ;;  %v456_v34 = vmax.f32 %v2333_v2, 0.0  ;;  %v457_v37 = vmax.f32 %v2336_v3, 0.0  ;;  %vm474_vm7 = vcmp.ne.f32.partialorder %v2341_v6, %v2341_v6 }
  0xc9   : > { %v521_v9 = vsub.f32 0.0, %v505_v5  ;;  %v522_v16 = vsub.f32 0.0, %v506_v10  ;;  %v523_v17 = vsub.f32 0.0, %v507_v12  ;;  %v508_v20 = vand.u32 2147483647, %v2349_v13  ;;  %v2360_v23 = vld [vmem:[%s2318_s17 + $0x38] sm:$0xff] }
  0xca   : > { %v536_v11 = vmul.f32 1.442695, %v520_v7  ;;  %v509_v21 = vand.u32 2147483647, %v2352_v14  ;;  %v510_v26 = vand.u32 2147483647, %v2355_v18  ;;  %vm475_vm8 = vcmp.ne.f32.partialorder %v2344_v8, %v2344_v8 }
  0xcb   : > { %v538_v15 = vmul.f32 1.442695, %v521_v9  ;;  %v540_v19 = vmul.f32 1.442695, %v522_v16  ;;  %v542_v22 = vmul.f32 1.442695, %v523_v17  ;;  %vm476_vm11 = vcmp.ne.f32.partialorder %v2349_v13, %v2349_v13 }
  0xcc   : > { %1523 = vpow2.f32 %v536_v11  ;;  %v524_v24 = vsub.f32 0.0, %v508_v20  ;;  %v525_v25 = vsub.f32 0.0, %v509_v21  ;;  %v511_v27 = vand.u32 2147483647, %v2360_v23  ;;  %v2365_v28 = vld [vmem:[%s2318_s17 + $0x40] sm:$0xff]  ;;  %v2368_v29 = vld [vmem:[%s2318_s17 + $0x48] sm:$0xff] }
  0xcd   : > { %1525 = vpow2.f32 %v538_v15  ;;  %v526_v32 = vsub.f32 0.0, %v510_v26  ;;  %v512_v35 = vand.u32 2147483647, %v2365_v28  ;;  %v513_v36 = vand.u32 2147483647, %v2368_v29  ;;  %v2380_v48 = vld [vmem:[%s2318_s17 + $0x50] sm:$0xff] }
  0xce   : > { %1527 = vpow2.f32 %v540_v19  ;;  %v544_v30 = vmul.f32 1.442695, %v524_v24  ;;  %v546_v31 = vmul.f32 1.442695, %v525_v25  ;;  %v527_v33 = vsub.f32 0.0, %v511_v27  ;;  %v2383_v49 = vld [vmem:[%s2318_s17 + $0x58] sm:$0xff] }
  0xcf   : > { %1529 = vpow2.f32 %v542_v22  ;;  %v548_v38 = vmul.f32 1.442695, %v526_v32  ;;  %v458_v40 = vmax.f32 %v2341_v6, 0.0  ;;  %v459_v41 = vmax.f32 %v2344_v8, 0.0  ;;  %s3173_s4 = sld [smem:[#allocation27_spill]]  ;;  %s2838_s20 = scalar_lea.vmem [#allocation13], %s2329_s15 }
  0xd0   : > { %1531 = vpow2.f32 %v544_v30  ;;  %v550_v39 = vmul.f32 1.442695, %v527_v33  ;;  %v460_v42 = vmax.f32 %v2349_v13, 0.0  ;;  %v461_v43 = vmax.f32 %v2352_v14, 0.0 }
  0xd1   : > { %1533 = vpow2.f32 %v546_v31  ;;  %v462_v45 = vmax.f32 %v2355_v18, 0.0  ;;  %v528_v46 = vsub.f32 0.0, %v512_v35  ;;  %v529_v47 = vsub.f32 0.0, %v513_v36 }
  0xd2   : > { %1535 = vpow2.f32 %v548_v38  ;;  %v463_v57 = vmax.f32 %v2360_v23, 0.0  ;;  %v514_v60 = vand.u32 2147483647, %v2380_v48  ;;  %v515_v61 = vand.u32 2147483647, %v2383_v49 }
  0xd3   : > { %1537 = vpow2.f32 %v550_v39  ;;  %v552_v4 = vmul.f32 1.442695, %v528_v46  ;;  %v2392_v11 = vmul.f32 1.442695, %v529_v47  ;;  %vm477_vm13 = vcmp.ne.f32.partialorder %v2352_v14, %v2352_v14 }
  0xd4   : > { %v530_v33 = vsub.f32 0.0, %v514_v60  ;;  %vm478_vm15 = vcmp.ne.f32.partialorder %v2355_v18, %v2355_v18  ;;  %vm479_vm0 = vcmp.ne.f32.partialorder %v2360_v23, %v2360_v23 }
  0xd5   : > { %p847_p6 = scmp.eq.s32.totalorder %s3173_s4, 0  ;;  %p1262_p3 = scmp.ne.s32.totalorder %s3173_s4, 0 }
  0xd6   : > { %v1524_v44 = vpop.eup %1523  ;;  %v556_v12 = vmul.f32 1.442695, %v530_v33 }
  0xd7   : > { %v1526_v50 = vpop.eup %1525  ;;  %v568_v51 = vadd.f32 1.0, %v1524_v44  ;;  %v571_v52 = vmul.f32 -0.5, %v1524_v44  ;;  %v574_v53 = vand.u32 2147483647, %v1524_v44 }
  0xd8   : > { %v577_v54 = vadd.f32 1.0, %v1526_v50  ;;  %v580_v55 = vmul.f32 -0.5, %v1526_v50  ;;  %v583_v56 = vand.u32 2147483647, %v1526_v50  ;;  %v1528_v58 = vpop.eup %1527 }
  0xd9   : > { %1539 = vlog2.f32 %v568_v51  ;;  %v572_v59 = vadd.f32 1.0, %v571_v52  ;;  %v1530_v62 = vpop.eup %1529  ;;  %v586_v1 = vadd.f32 1.0, %v1528_v58  ;;  %vm2388_vm1 = vcmp.lt.f32.partialorder %v574_v53, 0.0004427343 }
  0xda   : > { %1541 = vlog2.f32 %v577_v54  ;;  %v581_v63 = vadd.f32 1.0, %v580_v55  ;;  %v589_v7 = vmul.f32 -0.5, %v1528_v58  ;;  %v592_v9 = vand.u32 2147483647, %v1528_v58  ;;  %v1532_v17 = vpop.eup %1531 }
  0xdb   : > { %v595_v10 = vadd.f32 1.0, %v1530_v62  ;;  %vm2394_vm2 = vcmp.lt.f32.partialorder %v583_v56, 0.0004427343  ;;  %1543 = vlog2.f32 %v586_v1  ;;  %v598_v15 = vmul.f32 -0.5, %v1530_v62  ;;  %v1534_v22 = vpop.eup %1533 }
  0xdc   : > { %v601_v16 = vand.u32 2147483647, %v1530_v62  ;;  %v573_v19 = vmul.f32 %v1524_v44, %v572_v59  ;;  %v582_v20 = vmul.f32 %v1526_v50, %v581_v63  ;;  %v590_v21 = vadd.f32 1.0, %v589_v7  ;;  %v1536_v35 = vpop.eup %1535 }
  0xdd   : > { %1545 = vlog2.f32 %v595_v10  ;;  %vm2400_vm4 = vcmp.lt.f32.partialorder %v592_v9, 0.0004427343  ;;  %v599_v25 = vadd.f32 1.0, %v598_v15  ;;  %v604_v26 = vadd.f32 1.0, %v1532_v17  ;;  %v2410_v44 = vpop.eup %1537 }
  0xde   : > { %v607_v27 = vmul.f32 -0.5, %v1532_v17  ;;  %v610_v30 = vand.u32 2147483647, %v1532_v17  ;;  %v613_v31 = vadd.f32 1.0, %v1534_v22  ;;  %v616_v32 = vmul.f32 -0.5, %v1534_v22 }
  0xdf   : > { %vm2406_vm6 = vcmp.lt.f32.partialorder %v601_v16, 0.0004427343  ;;  %1547 = vlog2.f32 %v604_v26  ;;  %v619_v39 = vand.u32 2147483647, %v1534_v22  ;;  %v591_v46 = vmul.f32 %v1528_v58, %v590_v21 }
  0xe0   : > { %v608_v38 = vadd.f32 1.0, %v607_v27  ;;  %1549 = vlog2.f32 %v613_v31  ;;  %v617_v47 = vadd.f32 1.0, %v616_v32  ;;  %v622_v50 = vadd.f32 1.0, %v1536_v35  ;;  %v2450_v27 = vld [vmem:[%s2320_s28 + $0x8] sm:$0xff] }
  0xe1   : > { %v600_v51 = vmul.f32 %v1530_v62, %v599_v25  ;;  %vm2416_vm9 = vcmp.lt.f32.partialorder %v610_v30, 0.0004427343  ;;  %v625_v53 = vmul.f32 -0.5, %v1536_v35  ;;  %v628_v54 = vand.u32 2147483647, %v1536_v35  ;;  %v2440_v25 = vld [vmem:[%s2320_s28] sm:$0xff] }
  0xe2   : > { %v2420_v56 = vmul.f32 %v1532_v17, %v608_v38  ;;  %1551 = vlog2.f32 %v622_v50  ;;  %v631_v59 = vadd.f32 1.0, %v2410_v44  ;;  %v634_v58 = vmul.f32 -0.5, %v2410_v44  ;;  %v2483_v50 = vld [vmem:[%s2320_s28 + $0x18] sm:$0xff]  ;;  %v2546_v17 = vld [vmem:[%s2320_s28 + $0x28] sm:$0xff] }
  0xe3   : > { %v1540_v55 = vpop.eup %1539  ;;  %vm2424_vm10 = vcmp.lt.f32.partialorder %v619_v39, 0.0004427343  ;;  %v626_v62 = vadd.f32 1.0, %v625_v53  ;;  %1553 = vpow2.f32 %v552_v4  ;;  %v618_v9 = vmul.f32 %v1534_v22, %v617_v47  ;;  %v409_v47 = vld [vmem:[%s2312_s19 + $0x8] sm:$0xff] }
  0xe4   : > { %v1542_v60 = vpop.eup %1541  ;;  %v570_v63 = vmul.f32 0.6931472, %v1540_v55  ;;  %1555 = vlog2.f32 %v631_v59  ;;  %v635_v10 = vadd.f32 1.0, %v634_v58  ;;  %vm2432_vm12 = vcmp.lt.f32.partialorder %v628_v54, 0.0004427343 }
  0xe5   : > { %v579_v7 = vmul.f32 0.6931472, %v1542_v60  ;;  %v1544_v15 = vpop.eup %1543  ;;  %v637_v21 = vand.u32 2147483647, %v2410_v44  ;;  %v531_v4 = vsub.f32 0.0, %v515_v61  ;;  %1557 = vpow2.f32 %v2392_v11  ;;  %v410_v60 = vld [vmem:[%s2312_s19 + $0x10] sm:$0xff] }
  0xe6   : > { %v576_v16 = vsel %vm2388_vm1, %v573_v19, %v570_v63  ;;  %v588_v26 = vmul.f32 0.6931472, %v1544_v15  ;;  %v627_v31 = vmul.f32 %v1536_v35, %v626_v62  ;;  %v636_v11 = vmul.f32 %v2410_v44, %v635_v10  ;;  %v2474_v35 = vld [vmem:[%s2320_s28 + $0x10] sm:$0xff]  ;;  %v411_v63 = vld [vmem:[%s2312_s19 + $0x18] sm:$0xff] }
  0xe7   : > { %v1546_v22 = vpop.eup %1545  ;;  %v585_v5 = vsel %vm2394_vm2, %v582_v20, %v579_v7  ;;  %v712_v19 = vadd.f32 %v576_v16, %v456_v34  ;;  %v408_v20 = vld [vmem:[%s2312_s19] sm:$0xff]  ;;  %v558_v38 = vmul.f32 1.442695, %v531_v4  ;;  %1559 = vpow2.f32 %v556_v12 }
  0xe8   : > { %v713_v61 = vadd.f32 %v585_v5, %v457_v37  ;;  %v597_v30 = vmul.f32 0.6931472, %v1546_v22  ;;  %v594_v32 = vsel %vm2400_vm4, %v591_v46, %v588_v26  ;;  %vm2522_vm14 = vcmp.lt.f32.partialorder %v637_v21, 0.0004427343 }
  0xe9   : > { %v2459_v34 = vsel %vm472_vm3, %v2333_v2, %v712_v19  ;;  %v1548_v39 = vpop.eup %1547  ;;  %v714_v24 = vadd.f32 %v594_v32, %v458_v40  ;;  %1561 = vpow2.f32 %v558_v38  ;;  %v2536_v19 = vld [vmem:[%s2320_s28 + $0x20] sm:$0xff]  ;;  %v413_v38 = vld [vmem:[%s2312_s19 + $0x28] sm:$0xff]  ;;  %vm480_vm1 = vcmp.ne.f32.partialorder %v2365_v28, %v2365_v28 }
  0xea   : > { %v2469_v37 = vsel %vm473_vm5, %v2336_v3, %v713_v61  ;;  %v744_v33 = vmul.f32 %v2459_v34, %v2440_v25  ;;  %v603_v2 = vsel %vm2406_vm6, %v600_v51, %v597_v30  ;;  %v1550_v44 = vpop.eup %1549  ;;  %v606_v53 = vmul.f32 0.6931472, %v1548_v39  ;;  %v2579_v39 = vld [vmem:[%s2320_s28 + $0x30] sm:$0xff] }
  0xeb   : > { %v745_v46 = vmul.f32 %v2469_v37, %v2450_v27  ;;  %v715_v3 = vadd.f32 %v603_v2, %v459_v41  ;;  %v2493_v40 = vsel %vm474_vm7, %v2341_v6, %v714_v24  ;;  %v615_v36 = vmul.f32 0.6931472, %v1550_v44 }
  0xec   : > { %v2487_v54 = vadd.f32 %v744_v33, %v408_v20  ;;  %v1552_v51 = vpop.eup %1551  ;;  %v746_v59 = vmul.f32 %v2493_v40, %v2474_v35  ;;  %v612_v58 = vsel %vm2416_vm9, %v2420_v56, %v606_v53  ;;  %v412_v20 = vld [vmem:[%s2312_s19 + $0x20] sm:$0xff]  ;;  %v464_v2 = vmax.f32 %v2365_v28, 0.0 }
  0xed   : > { %v2495_v55 = vadd.f32 %v745_v46, %v409_v47  ;;  %v2501_v41 = vsel %vm475_vm8, %v2344_v8, %v715_v3  ;;  %v2508_v6 = vpop.eup %1553  ;;  %v621_v7 = vsel %vm2424_vm10, %v618_v9, %v615_v36  ;;  %v716_v8 = vadd.f32 %v612_v58, %v460_v42 }
  0xee   : > { %v747_v62 = vmul.f32 %v2501_v41, %v2483_v50  ;;  %v624_v10 = vmul.f32 0.6931472, %v1552_v51  ;;  %v1556_v15 = vpop.eup %1555  ;;  %v717_v56 = vadd.f32 %v621_v7, %v461_v43  ;;  %v640_v4 = vadd.f32 1.0, %v2508_v6  ;;  %v415_v7 = vld [vmem:[%s2312_s19 + $0x38] sm:$0xff] }
  0xef   : > { %v1327_v52 = vpack.c.bf16 %v2495_v55, %v2487_v54  ;;  %v633_v9 = vmul.f32 0.6931472, %v1556_v15  ;;  %v2529_v42 = vpop.eup %1557  ;;  %v2531_v22 = vadd.f32 %v746_v59, %v410_v60  ;;  %v2542_v43 = vsel %vm476_vm11, %v2349_v13, %v716_v8  ;;  %v414_v59 = vld [vmem:[%s2312_s19 + $0x30] sm:$0xff] }
  0xf0   : > { %v630_v1 = vsel %vm2432_vm12, %v627_v31, %v624_v10  ;;  %v2533_v5 = vadd.f32 %v747_v62, %v411_v63  ;;  %1563 = vlog2.f32 %v640_v4  ;;  %v2552_v21 = vsel %vm477_vm13, %v2352_v14, %v717_v56  ;;  %v2609_v63 = vld [vmem:[%s2318_s17 + $0x60] sm:$0xff]  ;;  %v2612_v62 = vld [vmem:[%s2318_s17 + $0x68] sm:$0xff]  ;;  %v2623_v56 = vld [vmem:[%s2318_s17 + $0x78] sm:$0xff] }
  0xf1   : > { %1328 = vmatpush3.bf16.xpose.msra.mxu0 %v1327_v52  ;;  %v639_v26 = vsel %vm2522_vm14, %v636_v11, %v633_v9  ;;  %v718_v13 = vadd.f32 %v630_v1, %v462_v45  ;;  %v643_v61 = vmul.f32 -0.5, %v2508_v6  ;;  %v748_v14 = vmul.f32 %v2542_v43, %v2536_v19  ;;  %v2568_v12 = vpop.eup %1559  ;;  %v2620_v52 = vld [vmem:[%s2318_s17 + $0x70] sm:$0xff] }
  0xf2   : > { %1329 = vmatprep.subr.bf16.mxu0 %v3094_v0  ;;  %v719_v30 = vadd.f32 %v639_v26, %v463_v57  ;;  %v649_v31 = vadd.f32 1.0, %v2529_v42  ;;  %v1330_v45 = vpack.c.bf16 %v2533_v5, %v2531_v22  ;;  %v749_v32 = vmul.f32 %v2552_v21, %v2546_v17  ;;  %v2582_v57 = vld [vmem:[%s2320_s28 + $0x38] sm:$0xff] }
  0xf3   : > { %v2575_v11 = vpop.eup %1561  ;;  %v2585_v47 = vsel %vm478_vm15, %v2355_v18, %v718_v13  ;;  %v644_v24 = vadd.f32 1.0, %v643_v61  ;;  %v646_v44 = vand.u32 2147483647, %v2508_v6  ;;  %v652_v46 = vmul.f32 -0.5, %v2529_v42 }
  0xf4   : > { %v2588_v33 = vsel %vm479_vm0, %v2360_v23, %v719_v30  ;;  %1565 = vlog2.f32 %v649_v31  ;;  %v658_v18 = vadd.f32 1.0, %v2568_v12  ;;  %v2596_v3 = vadd.f32 %v748_v14, %v412_v20 }
  0xf5   : > { %v465_v23 = vmax.f32 %v2368_v29, 0.0  ;;  %v466_v53 = vmax.f32 %v2380_v48, 0.0  ;;  %v667_v36 = vadd.f32 1.0, %v2575_v11  ;;  %v2601_v51 = vadd.f32 %v749_v32, %v413_v38 }
  0xf6   : > { %v750_v58 = vmul.f32 %v2585_v47, %v2579_v39  ;;  %v751_v60 = vmul.f32 %v2588_v33, %v2582_v57  ;;  %1567 = vlog2.f32 %v658_v18  ;;  %v645_v8 = vmul.f32 %v2508_v6, %v644_v24 }
  0xf7   : > { %v467_v10 = vmax.f32 %v2383_v49, 0.0  ;;  %v661_v15 = vmul.f32 -0.5, %v2568_v12  ;;  %1569 = vlog2.f32 %v667_v36  ;;  %vm2625_vm2 = vcmp.lt.f32.partialorder %v646_v44, 0.0004427343 }
  0xf8   : > { %v653_v1 = vadd.f32 1.0, %v652_v46  ;;  %v655_v9 = vand.u32 2147483647, %v2529_v42  ;;  %v670_v26 = vmul.f32 -0.5, %v2575_v11  ;;  %vm481_vm3 = vcmp.ne.f32.partialorder %v2368_v29, %v2368_v29 }
  0xf9   : > { %1331 = vmatpush3.bf16.xpose.msra.mxu0 %v1330_v45  ;;  %v516_v13 = vand.u32 2147483647, %v2609_v63  ;;  %v517_v61 = vand.u32 2147483647, %v2612_v62  ;;  %v1333_v30 = vpack.c.bf16 %v2601_v51, %v2596_v3  ;;  %v2637_v14 = vadd.f32 %v750_v58, %v414_v59 }
  0xfa   : > { %1332 = vmatprep.subr.bf16.mxu0 %v3094_v0  ;;  %v1564_v16 = vpop.eup %1563  ;;  %v2639_v31 = vadd.f32 %v751_v60, %v415_v7  ;;  %v664_v45 = vand.u32 2147483647, %v2568_v12  ;;  %v662_v32 = vadd.f32 1.0, %v661_v15  ;;  %v671_v46 = vadd.f32 1.0, %v670_v26  ;;  %v2714_v15 = vld [vmem:[%s2320_s28 + $0x58] sm:$0xff] }
  0xfb   : > { %v642_v6 = vmul.f32 0.6931472, %v1564_v16  ;;  %v532_v38 = vsub.f32 0.0, %v516_v13  ;;  %v533_v24 = vsub.f32 0.0, %v517_v61  ;;  %v518_v18 = vand.u32 2147483647, %v2620_v52 }
  0xfc   : > { %v519_v36 = vand.u32 2147483647, %v2623_v56  ;;  %v654_v59 = vmul.f32 %v2529_v42, %v653_v1  ;;  %v673_v58 = vand.u32 2147483647, %v2575_v11  ;;  %vm2648_vm4 = vcmp.lt.f32.partialorder %v655_v9, 0.0004427343 }
  0xfd   : > { %v648_v20 = vsel %vm2625_vm2, %v645_v8, %v642_v6  ;;  %v560_v60 = vmul.f32 1.442695, %v532_v38  ;;  %v562_v7 = vmul.f32 1.442695, %v533_v24  ;;  %vm2652_vm5 = vcmp.lt.f32.partialorder %v664_v45, 0.0004427343 }
  0xfe   : > { %v720_v44 = vadd.f32 %v648_v20, %v464_v2  ;;  %v1566_v16 = vpop.eup %1565  ;;  %v534_v2 = vsub.f32 0.0, %v518_v18  ;;  %v535_v4 = vsub.f32 0.0, %v519_v36  ;;  %v2658_v42 = vld [vmem:[%s2320_s28 + $0x40] sm:$0xff]  ;;  %v663_v26 = vmul.f32 %v2568_v12, %v662_v32  ;;  %v2677_v12 = vld [vmem:[%s2320_s28 + $0x48] sm:$0xff]  ;;  %v2711_v8 = vld [vmem:[%s2320_s28 + $0x50] sm:$0xff]  ;;  %3164 = vst [vmem:[#allocation37_spill] sm:$0xff] %v2714_v15 }
  0xff   : > { %v651_v1 = vmul.f32 0.6931472, %v1566_v16  ;;  %1571 = vpow2.f32 %v560_v60  ;;  %v672_v13 = vmul.f32 %v2575_v11, %v671_v46  ;;  %v1336_v20 = vpack.c.bf16 %v2639_v31, %v2637_v14  ;;  %v416_v46 = vld [vmem:[%s2312_s19 + $0x40] sm:$0xff]  ;;  %v417_v36 = vld [vmem:[%s2312_s19 + $0x48] sm:$0xff] }
 0x100   : > { %v2664_v9 = vsel %vm480_vm1, %v2365_v28, %v720_v44  ;;  %v1568_v6 = vpop.eup %1567  ;;  %1573 = vpow2.f32 %v562_v7  ;;  %v564_v61 = vmul.f32 1.442695, %v534_v2  ;;  %vm2672_vm6 = vcmp.lt.f32.partialorder %v673_v58, 0.0004427343 }
 0x101   : > { %1334 = vmatpush3.bf16.xpose.msra.mxu0 %v1333_v30  ;;  %v566_v30 = vmul.f32 1.442695, %v535_v4  ;;  %v1570_v45 = vpop.eup %1569  ;;  %v657_v38 = vsel %vm2648_vm4, %v654_v59, %v651_v1  ;;  %v660_v28 = vmul.f32 0.6931472, %v1568_v6  ;;  %v752_v32 = vmul.f32 %v2664_v9, %v2658_v42 }
 0x102   : > { %1335 = vmatprep.subr.bf16.mxu0 %v3094_v0  ;;  %v721_v11 = vadd.f32 %v657_v38, %v465_v23  ;;  %v669_v44 = vmul.f32 0.6931472, %v1570_v45  ;;  %1575 = vpow2.f32 %v564_v61  ;;  %vm482_vm7 = vcmp.ne.f32.partialorder %v2380_v48, %v2380_v48  ;;  %v418_v61 = vld [vmem:[%s2312_s19 + $0x50] sm:$0xff] }
 0x103   : > { %v666_v18 = vsel %vm2652_vm5, %v663_v26, %v660_v28  ;;  %1577 = vpow2.f32 %v566_v30  ;;  %vm483_vm8 = vcmp.ne.f32.partialorder %v2383_v49, %v2383_v49  ;;  %v419_v30 = vld [vmem:[%s2312_s19 + $0x58] sm:$0xff]  ;;  %vm484_vm10 = vcmp.ne.f32.partialorder %v2609_v63, %v2609_v63 }
 0x104   : > { %v2693_v23 = vsel %vm481_vm3, %v2368_v29, %v721_v11  ;;  %v675_v59 = vsel %vm2672_vm6, %v672_v13, %v669_v44  ;;  %v722_v58 = vadd.f32 %v666_v18, %v466_v53  ;;  %v2705_v29 = vadd.f32 %v752_v32, %v416_v46 }
 0x105   : > { %v753_v60 = vmul.f32 %v2693_v23, %v2677_v12  ;;  %v723_v7 = vadd.f32 %v675_v59, %v467_v10  ;;  %vm485_vm12 = vcmp.ne.f32.partialorder %v2612_v62, %v2612_v62  ;;  %vm486_vm15 = vcmp.ne.f32.partialorder %v2620_v52, %v2620_v52 }
 0x106   : > { %v2720_v53 = vsel %vm482_vm7, %v2380_v48, %v722_v58  ;;  %vm487_vm0 = vcmp.ne.f32.partialorder %v2623_v56, %v2623_v56 }
 0x107   : > { %v2708_v16 = vadd.f32 %v753_v60, %v417_v36  ;;  %v2723_v10 = vsel %vm483_vm8, %v2383_v49, %v723_v7  ;;  %v754_v26 = vmul.f32 %v2720_v53, %v2711_v8 }
 0x108   : > { %v755_v6 = vmul.f32 %v2723_v10, %v2714_v15  ;;  %v420_v15 = vld [vmem:[%s2312_s19 + $0x60] sm:$0xff] }
 0x109   : > { %1337 = vmatpush3.bf16.xpose.msra.mxu0 %v1336_v20  ;;  %v1572_v2 = vpop.eup %1571  ;;  %v1339_v1 = vpack.c.bf16 %v2708_v16, %v2705_v29  ;;  %v2733_v28 = vadd.f32 %v754_v26, %v418_v61  ;;  %v468_v61 = vmax.f32 %v2609_v63, 0.0 }
 0x10a   : > { %1338 = vmatprep.subr.bf16.mxu0 %v3094_v0  ;;  %v1574_v4 = vpop.eup %1573  ;;  %v676_v13 = vadd.f32 1.0, %v1572_v2  ;;  %v679_v49 = vmul.f32 -0.5, %v1572_v2  ;;  %v2735_v24 = vadd.f32 %v755_v6, %v419_v30  ;;  %v682_v59 = vand.u32 2147483647, %v1572_v2  ;;  %v776_v30 = vld [vmem:[%s334_s18] sm:$0xff] }
 0x10b   : > { %v685_v45 = vadd.f32 1.0, %v1574_v4  ;;  %v688_v11 = vmul.f32 -0.5, %v1574_v4  ;;  %v691_v60 = vand.u32 2147483647, %v1574_v4 }
 0x10c   : > { %v1576_v48 = vpop.eup %1575  ;;  %1579 = vlog2.f32 %v676_v13  ;;  %v680_v46 = vadd.f32 1.0, %v679_v49  ;;  %v1342_v36 = vpack.c.bf16 %v2735_v24, %v2733_v28  ;;  %vm2741_vm9 = vcmp.lt.f32.partialorder %v682_v59, 0.0004427343 }
 0x10d   : > { %v1578_v20 = vpop.eup %1577  ;;  %1581 = vlog2.f32 %v685_v45  ;;  %v694_v38 = vadd.f32 1.0, %v1576_v48  ;;  %v697_v44 = vmul.f32 -0.5, %v1576_v48  ;;  %v689_v58 = vadd.f32 1.0, %v688_v11 }
 0x10e   : > { %v703_v32 = vadd.f32 1.0, %v1578_v20  ;;  %v706_v18 = vmul.f32 -0.5, %v1578_v20  ;;  %v700_v26 = vand.u32 2147483647, %v1576_v48  ;;  %v709_v49 = vand.u32 2147483647, %v1578_v20 }
 0x10f   : > { %1583 = vlog2.f32 %v694_v38  ;;  %v698_v7 = vadd.f32 1.0, %v697_v44  ;;  %v690_v45 = vmul.f32 %v1574_v4, %v689_v58  ;;  %v469_v11 = vmax.f32 %v2612_v62, 0.0 }
 0x110   : > { %1585 = vlog2.f32 %v703_v32  ;;  %v707_v6 = vadd.f32 1.0, %v706_v18  ;;  %vm2749_vm11 = vcmp.lt.f32.partialorder %v691_v60, 0.0004427343  ;;  %v470_v44 = vmax.f32 %v2620_v52, 0.0 }
 0x111   : > { %1340 = vmatpush3.bf16.xpose.msra.mxu0 %v1339_v1  ;;  %v681_v1 = vmul.f32 %v1572_v2, %v680_v46  ;;  %v699_v46 = vmul.f32 %v1576_v48, %v698_v7  ;;  %v471_v59 = vmax.f32 %v2623_v56, 0.0  ;;  %vm2759_vm13 = vcmp.lt.f32.partialorder %v700_v26, 0.0004427343 }
 0x112   : > { %1341 = vmatprep.subr.bf16.mxu0 %v3094_v0  ;;  %v708_v60 = vmul.f32 %v1578_v20, %v707_v6  ;;  %vm2768_vm14 = vcmp.lt.f32.partialorder %v709_v49, 0.0004427343  ;;  %v2798_v49 = vld [vmem:[%s2320_s28 + $0x70] sm:$0xff] }
 0x116   : > { %v1580_v13 = vpop.eup %1579 }
 0x117   : > { %v1582_v38 = vpop.eup %1581  ;;  %v678_v2 = vmul.f32 0.6931472, %v1580_v13 }
 0x118   : > { %v687_v4 = vmul.f32 0.6931472, %v1582_v38 }
 0x119   : > { %1343 = vmatpush3.bf16.xpose.msra.mxu0 %v1342_v36  ;;  %v1584_v18 = vpop.eup %1583  ;;  %v684_v36 = vsel %vm2741_vm9, %v681_v1, %v678_v2  ;;  %v2773_v1 = vld [vmem:[%s2320_s28 + $0x68] sm:$0xff] }
 0x11a   : > { %1344 = vmatprep.subr.bf16.mxu0 %v3094_v0  ;;  %v1586_v13 = vpop.eup %1585  ;;  %v2764_v0 = vld [vmem:[%s2320_s28 + $0x60] sm:$0xff]  ;;  %v693_v38 = vsel %vm2749_vm11, %v690_v45, %v687_v4  ;;  %v724_v48 = vadd.f32 %v684_v36, %v468_v61  ;;  %v696_v7 = vmul.f32 0.6931472, %v1584_v18  ;;  %v421_v61 = vld [vmem:[%s2312_s19 + $0x68] sm:$0xff] }
 0x11b   : > { %v725_v26 = vadd.f32 %v693_v38, %v469_v11  ;;  %v705_v2 = vmul.f32 0.6931472, %v1586_v13  ;;  %v423_v38 = vld [vmem:[%s2312_s19 + $0x78] sm:$0xff] }
 0x11c   : > { %v2780_v20 = vsel %vm484_vm10, %v2609_v63, %v724_v48  ;;  %v702_v6 = vsel %vm2759_vm13, %v699_v46, %v696_v7  ;;  %v2805_v46 = vld [vmem:[%s2320_s28 + $0x78] sm:$0xff]  ;;  %v3174_v7 = vmov 0.0|0.0  }
 0x11d   : > { %v2793_v45 = vsel %vm485_vm12, %v2612_v62, %v725_v26  ;;  %v756_v63 = vmul.f32 %v2780_v20, %v2764_v0  ;;  %v711_v11 = vsel %vm2768_vm14, %v708_v60, %v705_v2  ;;  %v726_v32 = vadd.f32 %v702_v6, %v470_v44  ;;  %v422_v60 = vld [vmem:[%s2312_s19 + $0x70] sm:$0xff] }
 0x11e   : > { %v757_v4 = vmul.f32 %v2793_v45, %v2773_v1  ;;  %v727_v18 = vadd.f32 %v711_v11, %v471_v59  ;;  %v1937_v6 = vmov (!%p1262_p3), 0.0  }
 0x11f   : > { %v2807_v36 = vadd.f32 %v756_v63, %v420_v15  ;;  %v2810_v62 = vsel %vm486_vm15, %v2620_v52, %v726_v32  ;;  %851 = vst [vmem:[%s2838_s20] sm:$0xff] (!%p1262_p3), %v1937_v6 }
 0x120   : > { %v2812_v58 = vadd.f32 %v757_v4, %v421_v61  ;;  %v2815_v13 = vsel %vm487_vm0, %v2623_v56, %v727_v18  ;;  %v758_v44 = vmul.f32 %v2810_v62, %v2798_v49 }
 0x121   : > { %v759_v59 = vmul.f32 %v2815_v13, %v2805_v46 }
 0x122   : > { %v1345_v15 = vpack.c.bf16 %v2812_v58, %v2807_v36  ;;  %v2825_v52 = vadd.f32 %v758_v44, %v422_v60 }
 0x123   : > { %v2827_v48 = vadd.f32 %v759_v59, %v423_v38 }
 0x124   : > { %1346 = vmatpush3.bf16.xpose.msra.mxu0 %v1345_v15 }
 0x125   : > { %1347 = vmatprep.subr.bf16.mxu0 %v3174_v7  ;;  %v1348_v56 = vpack.c.bf16 %v2827_v48, %v2825_v52 }
 0x12c   : > { %1349 = vmatpush3.bf16.xpose.msra.mxu0 %v1348_v56 }
 0x133   : > { %1324 = vmatmul.mubr.f32.vlgmr.msra.gmra.mrb[0].mxu0 %v776_v30 }
 0x201   : > { %850 = sbr.rel (%p1262_p3) target bundleno = 520 (0x208), region = 56 }
 0x206   : > { %v2835_v26 = vpop.f32.mrb[0].mxu0 }
 0x207   : > { %v1325_v2 = vpop.f32.mrb[1].mxu0 }
 0x208 PF: > { %v855_v61 = vmul.f32 %v2487_v54, %v2487_v54  ;;  %v856_v63 = vmul.f32 %v2495_v55, %v2495_v55  ;;  %v857_v11 = vmul.f32 %v2531_v22, %v2531_v22  ;;  %v858_v32 = vmul.f32 %v2533_v5, %v2533_v5  ;;  %s3176_s29 = sld [smem:[#allocation28_spill]]  ;;  %s3177_s8 = sld [smem:[#allocation27_spill]] }
 0x209   : > { %1587 = vlog2.f32 %v2459_v34  ;;  %v859_v18 = vmul.f32 %v2596_v3, %v2596_v3  ;;  %v860_v54 = vmul.f32 %v2601_v51, %v2601_v51  ;;  %v861_v34 = vmul.f32 %v2637_v14, %v2637_v14  ;;  %s1938_s6 = smov 0.0   ;;  %s1042_s16 = sshll.u32 %s2838_s20, 4  ;;  %s1043_s16 = int_to_ptr.vmem [resolvable:$true] %s1042_s16 }
 0x20a   : > { %v871_v4 = vadd.f32 %v856_v63, %v855_v61  ;;  %1589 = vlog2.f32 %v2469_v37  ;;  %v927_v22 = vmul.f32 %v2440_v25, %v2440_v25  ;;  %v862_v5 = vmul.f32 %v2639_v31, %v2639_v31  ;;  %s3179_s14 = sld [smem:[#allocation39_spill]]  ;;  %s1029_s25 = scalar_lea.sflag [#allocation6], %s398_s9 }
 0x20b   : > { %1591 = vlog2.f32 %v2493_v40  ;;  %v928_v40 = vmul.f32 %v2450_v27, %v2450_v27  ;;  %v864_v25 = vmul.f32 %v2708_v16, %v2708_v16  ;;  %v931_v31 = vmul.f32 %v2536_v19, %v2536_v19  ;;  %s1739_s13 = scalar_lea.vmem %s1043_s16, 128  ;;  %p3180_p8 = scmp.ne.s32.totalorder %s3125_s1, 0 }
 0x20c   : > { %v872_v44 = vadd.f32 %v871_v4, %v857_v11  ;;  %1593 = vlog2.f32 %v2501_v41  ;;  %v929_v41 = vmul.f32 %v2474_v35, %v2474_v35  ;;  %v943_v35 = vmul.f32 0.5, %v927_v22  ;;  %p1740_p0 = scmp.ne.s32.totalorder %s1043_s16, %s1739_s13  ;;  %s1939_s5 = smov [#allocation13]  }
 0x20d   : > { %1595 = vlog2.f32 %v2542_v43  ;;  %v933_v7 = vmul.f32 %v2579_v39, %v2579_v39  ;;  %v947_v63 = vmul.f32 0.5, %v931_v31  ;;  %v866_v4 = vmul.f32 %v2735_v24, %v2735_v24  ;;  %s1743_s19 = sshll.u32 %s1939_s5, 4  ;;  %s1744_s19 = int_to_ptr.vmem [resolvable:$false] %s1743_s19 }
 0x20e   : > { %v873_v55 = vadd.f32 %v872_v44, %v858_v32  ;;  %1597 = vlog2.f32 %v2552_v21  ;;  %v863_v21 = vmul.f32 %v2705_v29, %v2705_v29  ;;  %v945_v60 = vmul.f32 0.5, %v929_v41  ;;  %p999_p9 = scmp.eq.s32.totalorder %s3176_s29, 0  ;;  %p1016_p11 = scmp.eq.s32.totalorder %s3176_s29, 1 }
 0x20f   : > { %1599 = vlog2.f32 %v2585_v47  ;;  %v930_v47 = vmul.f32 %v2483_v50, %v2483_v50  ;;  %v865_v29 = vmul.f32 %v2733_v28, %v2733_v28  ;;  %v934_v39 = vmul.f32 %v2582_v57, %v2582_v57  ;;  %p1017_p4 = scmp.eq.s32.totalorder %s3177_s8, 1  ;;  %s1264_s27 = sshll.u32 %s3176_s29, 7 }
 0x210   : > { %v874_v37 = vadd.f32 %v873_v55, %v859_v18  ;;  %1601 = vlog2.f32 %v2588_v33  ;;  %v944_v33 = vmul.f32 0.5, %v928_v40  ;;  %v935_v24 = vmul.f32 %v2658_v42, %v2658_v42  ;;  %p1000_p1 = pnand %p999_p9, %p847_p6  ;;  %s2939_s23 = scalar_lea.hbm %s3179_s14, %s1264_s27 }
 0x211   : > { %1603 = vlog2.f32 %v2664_v9  ;;  %v932_v9 = vmul.f32 %v2546_v17, %v2546_v17  ;;  %v946_v56 = vmul.f32 0.5, %v930_v47  ;;  %v949_v40 = vmul.f32 0.5, %v933_v7  ;;  %p2927_p2 = pnand %p1017_p4, %p1016_p11  ;;  %p1741_p10 = pnand %p1740_p0, %p3180_p8 }
 0x212   : > { %v875_v43 = vadd.f32 %v874_v37, %v860_v54  ;;  %1605 = vlog2.f32 %v2693_v23  ;;  %v868_v57 = vmul.f32 %v2812_v58, %v2812_v58  ;;  %v950_v47 = vmul.f32 0.5, %v934_v39  ;;  %1363 = sst [smem:[#allocation2]] (!%p1000_p1), %s1938_s6  ;;  %s1745_s17 = scalar_lea.vmem %s1744_s19, 256 }
 0x213   : > { %v1588_v3 = vpop.eup %1587  ;;  %1607 = vlog2.f32 %v2720_v53  ;;  %v948_v44 = vmul.f32 0.5, %v932_v9  ;;  %v869_v42 = vmul.f32 %v2825_v52, %v2825_v52  ;;  %v937_v58 = vmul.f32 %v2711_v8, %v2711_v8  ;;  %1364 = sst [smem:[#allocation3]] (!%p1000_p1), %s1938_s6  ;;  %p1742_p13 = pneg %p1741_p10 }
 0x214   : > { %v876_v27 = vadd.f32 %v875_v43, %v861_v34  ;;  %v1590_v51 = vpop.eup %1589  ;;  %v896_v14 = vmul.f32 0.6931472, %v1588_v3  ;;  %1609 = vlog2.f32 %v2723_v10  ;;  %v867_v34 = vmul.f32 %v2807_v36, %v2807_v36  ;;  %p1746_p7 = scmp.lt.s32.totalorder %s1043_s16, %s1744_s19  ;;  %p1747_p12 = scmp.lt.s32.totalorder %s1745_s17, %s1739_s13 }
 0x215   : > { %v1592_v38 = vpop.eup %1591  ;;  %v898_v59 = vmul.f32 0.6931472, %v1590_v51  ;;  %1611 = vlog2.f32 %v2780_v20  ;;  %v936_v36 = vmul.f32 %v2677_v12, %v2677_v12  ;;  %v951_v51 = vmul.f32 0.5, %v935_v24 }
 0x216   : > { %v877_v50 = vadd.f32 %v876_v27, %v862_v5  ;;  %v1594_v16 = vpop.eup %1593  ;;  %v900_v15 = vmul.f32 0.6931472, %v1592_v38  ;;  %v959_v6 = vadd.f32 %v943_v35, %v896_v14  ;;  %1613 = vlog2.f32 %v2793_v45  ;;  %p1748_p5 = por %p1747_p12, %p1746_p7 }
 0x217   : > { %v1596_v19 = vpop.eup %1595  ;;  %v902_v2 = vmul.f32 0.6931472, %v1594_v16  ;;  %v960_v11 = vadd.f32 %v944_v33, %v898_v59  ;;  %1615 = vlog2.f32 %v2810_v62  ;;  %v870_v12 = vmul.f32 %v2827_v48, %v2827_v48 }
 0x218   : > { %v878_v30 = vadd.f32 %v877_v50, %v863_v21  ;;  %v1598_v28 = vpop.eup %1597  ;;  %v904_v61 = vmul.f32 0.6931472, %v1596_v19  ;;  %v961_v23 = vadd.f32 %v945_v60, %v900_v15  ;;  %1617 = vlog2.f32 %v2815_v13  ;;  %v3175_v60 = vld [vmem:[#allocation37_spill] sm:$0xff]  ;;  %p1749_p6 = pnand %p1748_p5, %p1742_p13 }
 0x219   : > { %v1600_v32 = vpop.eup %1599  ;;  %v906_v18 = vmul.f32 0.6931472, %v1598_v28  ;;  %v962_v54 = vadd.f32 %v946_v56, %v902_v2  ;;  %v975_v53 = vadd.f32 %v960_v11, %v959_v6  ;;  %v938_v52 = vmul.f32 %v3175_v60, %v3175_v60 }
 0x21a   : > { %v879_v17 = vadd.f32 %v878_v30, %v864_v25  ;;  %v1602_v55 = vpop.eup %1601  ;;  %v908_v22 = vmul.f32 0.6931472, %v1600_v32  ;;  %v963_v10 = vadd.f32 %v947_v63, %v904_v61  ;;  %v939_v16 = vmul.f32 %v2764_v0, %v2764_v0 }
 0x21b   : > { %v976_v41 = vadd.f32 %v975_v53, %v961_v23  ;;  %v1604_v5 = vpop.eup %1603  ;;  %v910_v21 = vmul.f32 0.6931472, %v1602_v55  ;;  %v964_v20 = vadd.f32 %v948_v44, %v906_v18  ;;  %v953_v9 = vmul.f32 0.5, %v937_v58 }
 0x21c   : > { %v880_v37 = vadd.f32 %v879_v17, %v865_v29  ;;  %v1606_v25 = vpop.eup %1605  ;;  %v912_v35 = vmul.f32 0.6931472, %v1604_v5  ;;  %v965_v45 = vadd.f32 %v949_v40, %v908_v22  ;;  %v952_v29 = vmul.f32 0.5, %v936_v36  ;;  %v852_v36 = vld [vmem:[%s2838_s20] sm:$0xff] }
 0x21d   : > { %v977_v3 = vadd.f32 %v976_v41, %v962_v54  ;;  %v1608_v31 = vpop.eup %1607  ;;  %v914_v38 = vmul.f32 0.6931472, %v1606_v25  ;;  %v966_v62 = vadd.f32 %v950_v47, %v910_v21  ;;  %v940_v13 = vmul.f32 %v2773_v1, %v2773_v1 }
 0x21e   : > { %v881_v43 = vadd.f32 %v880_v37, %v866_v4  ;;  %v1610_v59 = vpop.eup %1609  ;;  %v916_v15 = vmul.f32 0.6931472, %v1608_v31  ;;  %v967_v7 = vadd.f32 %v951_v51, %v912_v35  ;;  %v954_v2 = vmul.f32 0.5, %v938_v52 }
 0x21f   : > { %v978_v14 = vadd.f32 %v977_v3, %v963_v10  ;;  %v1612_v48 = vpop.eup %1611  ;;  %v918_v30 = vmul.f32 0.6931472, %v1610_v59  ;;  %v968_v6 = vadd.f32 %v952_v29, %v914_v38  ;;  %v941_v63 = vmul.f32 %v2798_v49, %v2798_v49 }
 0x220   : > { %v882_v27 = vadd.f32 %v881_v43, %v867_v34  ;;  %v1614_v61 = vpop.eup %1613  ;;  %v920_v11 = vmul.f32 0.6931472, %v1612_v48  ;;  %v955_v0 = vmul.f32 0.5, %v939_v16  ;;  %v969_v23 = vadd.f32 %v953_v9, %v916_v15 }
 0x221   : > { %v979_v50 = vadd.f32 %v978_v14, %v964_v20  ;;  %v1616_v4 = vpop.eup %1615  ;;  %v942_v17 = vmul.f32 %v2805_v46, %v2805_v46  ;;  %v922_v39 = vmul.f32 0.6931472, %v1614_v61  ;;  %v956_v18 = vmul.f32 0.5, %v940_v13 }
 0x222   : > { %v883_v33 = vadd.f32 %v882_v27, %v868_v57  ;;  %v970_v1 = vadd.f32 %v954_v2, %v918_v30  ;;  %v1618_v54 = vpop.eup %1617  ;;  %v924_v53 = vmul.f32 0.6931472, %v1616_v4  ;;  %v957_v55 = vmul.f32 0.5, %v941_v63 }
 0x223   : > { %v980_v56 = vadd.f32 %v979_v50, %v965_v45  ;;  %v971_v34 = vadd.f32 %v955_v0, %v920_v11  ;;  %v926_v49 = vmul.f32 0.6931472, %v1618_v54  ;;  %v958_v24 = vmul.f32 0.5, %v942_v17 }
 0x224   : > { %v884_v8 = vadd.f32 %v883_v33, %v869_v42  ;;  %v972_v22 = vadd.f32 %v956_v18, %v922_v39  ;;  %v973_v10 = vadd.f32 %v957_v55, %v924_v53  ;;  %v853_v21 = vadd.f32 %v852_v36, %v2835_v26 }
 0x225   : > { %v981_v28 = vadd.f32 %v980_v56, %v966_v62  ;;  %v974_v41 = vadd.f32 %v958_v24, %v926_v49 }
 0x226   : > { %v885_v19 = vadd.f32 %v884_v8, %v870_v12  ;;  %854 = vst [vmem:[%s2838_s20] sm:$0xff] %v853_v21 }
 0x227   : > { %v982_v32 = vadd.f32 %v981_v28, %v967_v7 }
 0x228   : > { %886 = vadd.xlane.f32.xlu0 %v885_v19 }
 0x229   : > { %v983_v44 = vadd.f32 %v982_v32, %v968_v6 }
 0x22b   : > { %v984_v37 = vadd.f32 %v983_v44, %v969_v23 }
 0x22d   : > { %v985_v40 = vadd.f32 %v984_v37, %v970_v1 }
 0x22f   : > { %v986_v46 = vadd.f32 %v985_v40, %v971_v34 }
 0x231   : > { %v987_v5 = vadd.f32 %v986_v46, %v972_v22 }
 0x233   : > { %v988_v57 = vadd.f32 %v987_v5, %v973_v10 }
 0x235   : > { %v989_v43 = vadd.f32 %v988_v57, %v974_v41 }
 0x237   : > { %990 = vadd.xlane.f32.xlu0 %v989_v43 }
 0x238   : > { %1752 = shalt.err (!%p1749_p6)
}
 0x239   : > { %s1753_s24 = scalar_lea.hbm %s2939_s23, 128  ;;  %s1757_s15 = scalar_lea.hbm %s3179_s14, 256 }
 0x23a   : > { %p1754_p3 = scmp.ne.s32.totalorder %s2939_s23, %s1753_s24  ;;  %p1758_p11 = scmp.lt.u32.totalorder %s2939_s23, %s3179_s14 }
 0x23b   : > { %p1759_p4 = scmp.lt.u32.totalorder %s1757_s15, %s1753_s24  ;;  %p1761_p10 = scmp.lt.u32.totalorder %s1753_s24, %s2939_s23 }
 0x23c   : > { %p1755_p9 = pnand %p1754_p3, %p3180_p8 }
 0x23d   : > { %p1760_p0 = por %p1759_p4, %p1758_p11 }
 0x23e   : > { %p1756_p1 = pneg %p1755_p9 }
 0x23f   : > { %p1762_p13 = por %p1761_p10, %p1760_p0 }
 0x241   : > { %p1763_p7 = pnand %p1762_p13, %p1756_p1 }
 0x243   : > { %1766 = shalt.err (!%p1763_p7)
}
 0x244   : > { %1368 = dma.vmem_to_hbm [thread:$0]  (%p3180_p8), %s1043_s16, 128, %s2939_s23, %s1029_s25  }
 0x245   : > { %s1008_s1 = sld [smem:[#allocation2]]  ;;  %s3181_s16 = sld [smem:[#allocation40_spill]] }
 0x246   : > { %p3182_p12 = scmp.eq.s32.totalorder %s2122_s11, 3 }
 0x24b   : > { %s1767_s12 = scalar_lea.hbm %s3181_s16, 16 }
 0x24c   : > { %p1768_p8 = scmp.ne.s32.totalorder %s3181_s16, %s1767_s12  ;;  %p1773_p3 = scmp.lt.u32.totalorder %s1767_s12, %s3181_s16 }
 0x24e   : > { %p1769_p5 = pnand %p1768_p8, %p3182_p12 }
 0x250   : > { %p1770_p6 = pneg %p1769_p5 }
 0x252   : > { %p1775_p9 = pnand %p1773_p3, %p1770_p6 }
 0x2b5   : > { %v887_v26 = vpop.xlane.xlu0 %886 }
 0x2b6   : > { %v888_v47 = vrot.slane %v887_v26, 4 }
 0x2b8   : > { %v889_v20 = vadd.f32 %v888_v47, %v887_v26 }
 0x2ba   : > { %v890_v3 = vrot.slane %v889_v20, 2 }
 0x2bc   : > { %v891_v25 = vadd.f32 %v890_v3, %v889_v20 }
 0x2be   : > { %v892_v42 = vrot.slane %v891_v25, 1 }
 0x2c0   : > { %v893_v27 = vadd.f32 %v892_v42, %v891_v25 }
 0x2c2   : > { %1350 = vpush %v893_v27 }
 0x2c4   : > { %v991_v58 = vpop.xlane.xlu0 %990 }
 0x2c5   : > { %v992_v35 = vrot.slane %v991_v58, 4 }
 0x2c7   : > { %v993_v51 = vadd.f32 %v992_v35, %v991_v58 }
 0x2c9   : > { %v994_v45 = vrot.slane %v993_v51, 2 }
 0x2cb   : > { %v995_v14 = vadd.f32 %v994_v45, %v993_v51 }
 0x2cd   : > { %v996_v31 = vrot.slane %v995_v14, 1 }
 0x2cf   : > { %v997_v12 = vadd.f32 %v996_v31, %v995_v14 }
 0x2d1   : > { %1352 = vpush %v997_v12 }
 0x2f3   : > { %s1351_s29 = spop %1350 }
 0x2f4   : > { %s1009_s8 = sadd.f32 %s1351_s29, %s1008_s1 }
 0x2f6   : > { %1011 = sst [smem:[#allocation2]] %s1009_s8 }
 0x2f7   : > { %1366 = sst [smem:[#allocation14]] (!%p2927_p2), %s1009_s8 }
 0x2f8   : > { %1778 = shalt.err (!%p1775_p9)
}
 0x2f9   : > { %s1940_s5 = smov [#allocation14]   ;;  %p3183_p1 = pmov %p3182_p12 }
 0x2fa   : > { %s1012_s24 = sld [smem:[#allocation3]]  ;;  %s3184_s20 = sld [smem:[#allocation41_spill]] }
 0x2fb   : > { %1370 = dma.smem_to_hbm (%p3183_p1), %s1940_s5, 16, %s3181_s16, [#allocation7]  }
 0x2fc   : > { %p3185_p4 = pmov %p3183_p1 }
 0x300   : > { %s1779_s1 = scalar_lea.hbm %s3184_s20, 16 }
 0x301   : > { %p1780_p11 = scmp.ne.s32.totalorder %s3184_s20, %s1779_s1  ;;  %p1785_p13 = scmp.lt.u32.totalorder %s1779_s1, %s3184_s20 }
 0x302   : > { %s1353_s28 = spop %1352 }
 0x303   : > { %s1013_s9 = sadd.f32 %s1353_s28, %s1012_s24  ;;  %p1781_p0 = pnand %p1780_p11, %p3185_p4 }
 0x305   : > { %1015 = sst [smem:[#allocation3]] %s1013_s9  ;;  %p1782_p10 = pneg %p1781_p0 }
 0x306   : > { %1367 = sst [smem:[#allocation15]] (!%p2927_p2), %s1013_s9 }
 0x307   : > { %p1787_p7 = pnand %p1785_p13, %p1782_p10 }
 0x309   : > { %1790 = shalt.err (!%p1787_p7)
}
 0x30a   : > { %s1941_s12 = smov [#allocation15]   ;;  %p3186_p2 = pmov %p3183_p1 }
 0x30b   : > { %p3187_p8 = pmov %p3183_p1 }
 0x30c   : > { %1372 = dma.smem_to_hbm (%p3186_p2), %s1941_s12, 16, %s3184_s20, [#allocation16]  }
 0x30d   : > { %1860 = dma.done.wait (%p3187_p8), [#allocation7], 16   ;;  %p3188_p12 = pmov %p3183_p1 }
 0x30e   : > { %p3189_p5 = pmov %p3183_p1 }
 0x30f   : > { %1862 = vsyncadd (%p3188_p12), [#allocation7], 4294967280 }
 0x310   : > { %1864 = dma.done.wait (%p3189_p5), [#allocation16], 16   ;;  %p3190_p6 = pmov %p3183_p1 }
 0x312   : > { %1866 = vsyncadd (%p3190_p6), [#allocation16], 4294967280 }
 0x313   : > { %1072 = sfence }
 0x314 PF: > { %p1400_p3 = scmp.ge.s32.totalorder %s1925_s10, 2  ;;  %s1081_s23 = sand.u32 1, %s1873_s21  }
 0x315   : > { %p3191_p9 = scmp.ne.s32.totalorder %s3126_s30, 0  ;;  %s1082_s25 = scalar_lea.sflag [#allocation6], %s1081_s23 }
 0x317   : > { %p1392_p1 = pnand %p1400_p3, %p3191_p9 }
 0x319   : > { %1868 = dma.done.wait (!%p1392_p1), %s1082_s25, 128  }
 0x31a   : > { %1870 = vsyncadd (!%p1392_p1), %s1082_s25, 4294967168  ;;  %s31_s10 = sadd.s32 1, %s1925_s10   ;;  %s3193_s11 = sld [smem:[#allocation23_spill]] }
 0x31b   : > { %p3009_p11 = scmp.ge.s32.totalorder %s31_s10, 6   ;;  %s3194_s23 = sld [smem:[#allocation35_spill]] }
 0x31c   : > { %s3195_s24 = sld [smem:[#allocation24_spill]]  ;;  %s3196_s5 = sld [smem:[#allocation36_spill]] }
 0x31d   : > { %s3197_s27 = sld [smem:[#allocation25_spill]]  ;;  %s3198_s28 = sld [smem:[#allocation26_spill]] }
 0x31e   : > { %s3199_s29 = sld [smem:[#allocation34_spill]]  ;;  %s3200_s30 = sld [smem:[#allocation29_spill]] }
 0x31f   : > { %s3201_s7 = sld [smem:[#allocation30_spill]]  ;;  %s3202_s8 = sld [smem:[#allocation31_spill]] }
 0x320   : > { %s3203_s9 = sld [smem:[#allocation33_spill]]  ;;  %s3204_s21 = smov %s1877_s22 }
 0x321   : > { %s3205_s22 = smov %s3193_s11  ;;  %s3206_s25 = smov %s1893_s26 }
 0x322   : > { %s3207_s26 = smov %s3196_s5  ;;  %30 = sbr.rel (!%p3009_p11) target bundleno = 21 (0x15), region = 153 }
 0x329   :  { %1087 = vsyncpa [#allocation5], 1 }
 0x32a   :  { %1089 = vsyncpa [#allocation5 + $0x1], 1 }
 0x32b   :  { %1090 = vsyncpa [#allocation9], 1 }
 0x32c   :  { %1092 = vsyncpa [#allocation9 + $0x1], 1 }
 0x32d   :  { %1093 = vsyncpa [#allocation12], 1 }
 0x32e   :  { %1095 = vsyncpa [#allocation12 + $0x1], 1 }
 0x32f   :  { %1096 = vsyncpa [#allocation6], 1 }
 0x330   :  { %1098 = vsyncpa [#allocation6 + $0x1], 1 }
 0x331   :  { %1099 = vsyncpa [#allocation7], 1 }
 0x332   :  { %1101 = vsyncpa [#allocation7 + $0x1], 1 }
 0x333   :  { %1102 = vsyncpa [#allocation16], 1 }

</bundles_post_ra>
